<compile_context>
chip_gen: v7x
topology: tpu7x:2x2x1
jax: 0.10.0
libtpu: 0.0.40
codegen_flags: <defaults>
</compile_context>

<pallas_src>
import functools

import jax
import jax.numpy as jnp
from jax import lax
from jax.experimental import pallas as pl
from jax.experimental.pallas import tpu as pltpu


def _vmem_budget_bytes():
    """Device-aware VMEM limit: physical capacity minus headroom.

    v5e/v6e (128 MiB) -> ~120 MiB (bigger tiles allowed); v7x (64 MiB / TC) -> ~56 MiB.
    """
    try:
        phys = int(pltpu.get_tpu_info().vmem_capacity_bytes)
    except Exception:
        phys = 64 * 1024 * 1024
    return max(phys - 8 * 1024 * 1024, 32 * 1024 * 1024)


def _pick_seq_block(tp, cap):
    for c in (1024, 512, 256, 128):
        if c <= cap and tp % c == 0:
            return c
    return tp  # unreachable after padding to a multiple of 128; kept for safety


# ---------------- kernel 1: fused QKV projection, head-major outputs ----------------

def _qkv_proj_kernel(x_ref, w_ref, b_ref, q_ref, k_ref, v_ref, *, n_head, hd):
    x = x_ref[0]                                                         # (Tm, D)
    # one MXU matmul with N = 3*D, f32 accumulation (scale already folded into Wq/Wk/bq)
    y = jnp.dot(x, w_ref[...], preferred_element_type=jnp.float32) + b_ref[...]  # (Tm, 3D)
    d = n_head * hd
    # head-major stores straight from VMEM (static column slices): no HBM relayout later
    for h in range(n_head):
        q_ref[0, h] = y[:, h * hd:(h + 1) * hd].astype(q_ref.dtype)
        k_ref[0, h] = y[:, d + h * hd:d + (h + 1) * hd].astype(k_ref.dtype)
        v_ref[0, h] = y[:, 2 * d + h * hd:2 * d + (h + 1) * hd].astype(v_ref.dtype)


# ---------------- kernel 2: attention + fused output projection ----------------

def _attn_kernel(q_ref, k_ref, v_ref, wo_ref, bo_ref, out_ref, *rest,
                 n_head, hd, t_valid, t_padded, with_qk):
    if with_qk:
        qk_ref, cat_ref = rest
    else:
        (cat_ref,) = rest
    h = pl.program_id(2)

    q = q_ref[0, 0]                      # (Tq, hd)  scale folded into Wq
    k = k_ref[0, h]                      # (Tp, hd)  scale folded into Wk
    v = v_ref[0, h]                      # (Tp, hd)

    # scores: contract head dims directly (no materialized k.T)
    s = lax.dot_general(q, k, (((1,), (1,)), ((), ())),
                        preferred_element_type=jnp.float32)             # (Tq, Tp)
    if with_qk:
        qk_ref[0, 0] = s.astype(qk_ref.dtype)

    if t_padded != t_valid:
        # padded key columns must not take part in the softmax
        col = lax.broadcasted_iota(jnp.int32, s.shape, 1)
        s = jnp.where(col < t_valid, s, jnp.float32(-1e30))

    # f32 softmax stats; normalization deferred until after the PV matmul so the
    # per-element multiply touches (Tq, hd) instead of (Tq, Tp)
    m = jnp.max(s, axis=-1, keepdims=True)
    e = jnp.exp(s - m)
    r = pl.reciprocal(jnp.sum(e, axis=-1, keepdims=True), approx=True)  # (Tq, 1)

    wv = jnp.dot(e.astype(v.dtype), v, preferred_element_type=jnp.float32)  # (Tq, hd)
    wv = wv * r

    # concat this head's context into its column slot of the (Tq, D) scratch
    col0 = pl.multiple_of(h * hd, hd)
    cat_ref[:, pl.ds(col0, hd)] = wv.astype(cat_ref.dtype)

    # one full-depth (K = D) output projection per (batch, q-tile)
    @pl.when(h == pl.num_programs(2) - 1)
    def _():
        o = jnp.dot(cat_ref[...], wo_ref[...],
                    preferred_element_type=jnp.float32) + bo_ref[...]
        out_ref[0] = o.astype(out_ref.dtype)


# ---------------- wrapper ----------------

def multi_head_attention(x, params, n_head, *, compute_dtype=None,
                         qk_dtype=jnp.float32, return_qk=True):
    """x: (B, T, D); params: torch-layout Linear weights/biases.

    Returns (out, qk) like the PyTorch module. `qk` is float32 by default; pass
    return_qk=False to skip the (B, H, T, T) writeback (dominant HBM cost) or
    qk_dtype=jnp.bfloat16 to halve it.
    """
    B, T, D = x.shape
    assert D % n_head == 0
    hd = D // n_head
    scale = float(hd) ** (-0.25)
    cdt = compute_dtype if compute_dtype is not None else x.dtype
    vmem_bytes = _vmem_budget_bytes()

    # torch Linear weights are (out, in); transpose so kernels compute x @ W.
    # Fold the softmax scale into Wq/bq and Wk; fuse [Wq|Wk|Wv] into one (D, 3D) weight.
    wqkv = jnp.concatenate(
        [params["wq"].T * scale, params["wk"].T * scale, params["wv"].T],
        axis=1).astype(cdt)
    bqkv = jnp.concatenate(
        [params["bq"] * scale, jnp.zeros((D,), params["bq"].dtype), params["bv"]]
    ).reshape(1, 3 * D).astype(jnp.float32)
    wo = params["wo"].T.astype(cdt)                  # flat (D, D): one K=D out-proj matmul
    bo = params["bo"].reshape(1, D).astype(jnp.float32)

    # pad the sequence to a multiple of 128 (lane-dense tiles; masked / sliced afterwards)
    Tp = ((T + 127) // 128) * 128
    xc = x.astype(cdt)
    if Tp != T:
        xc = jnp.pad(xc, ((0, 0), (0, Tp - T), (0, 0)))

    # ---- kernel 1: fused QKV projection ----
    Tm = _pick_seq_block(Tp, 512)
    q, k, v = pl.pallas_call(
        functools.partial(_qkv_proj_kernel, n_head=n_head, hd=hd),
        out_shape=tuple(jax.ShapeDtypeStruct((B, n_head, Tp, hd), cdt)
                        for _ in range(3)),
        grid_spec=pltpu.PrefetchScalarGridSpec(
            num_scalar_prefetch=0,
            grid=(B, Tp // Tm),
            in_specs=[
                pl.BlockSpec((1, Tm, D), lambda b, t: (b, t, 0)),      # x tile
                pl.BlockSpec((D, 3 * D), lambda b, t: (0, 0)),         # [Wq|Wk|Wv] (resident)
                pl.BlockSpec((1, 3 * D), lambda b, t: (0, 0)),         # [bq|0|bv]
            ],
            out_specs=[
                pl.BlockSpec((1, n_head, Tm, hd), lambda b, t: (b, 0, t, 0)),
                pl.BlockSpec((1, n_head, Tm, hd), lambda b, t: (b, 0, t, 0)),
                pl.BlockSpec((1, n_head, Tm, hd), lambda b, t: (b, 0, t, 0)),
            ],
        ),
        compiler_params=pltpu.CompilerParams(
            dimension_semantics=("parallel", "parallel"),
            vmem_limit_bytes=vmem_bytes),
    )(xc, wqkv, bqkv)

    # ---- kernel 2: attention + fused output projection ----
    Tq = _pick_seq_block(Tp, 1024 if vmem_bytes >= 96 * 1024 * 1024 else 512)
    while B * (Tp // Tq) < 2 and Tq > 128:      # give v7x's two TensorCores >= 2 steps
        Tq //= 2

    out_block = pl.BlockSpec((1, Tq, D), lambda b, t, h: (b, t, 0))
    if return_qk:
        out_shape = (jax.ShapeDtypeStruct((B, Tp, D), x.dtype),
                     jax.ShapeDtypeStruct((B, n_head, Tp, Tp), qk_dtype))
        out_specs = [out_block,
                     pl.BlockSpec((1, 1, Tq, Tp), lambda b, t, h: (b, h, t, 0))]
    else:
        out_shape = jax.ShapeDtypeStruct((B, Tp, D), x.dtype)
        out_specs = out_block

    results = pl.pallas_call(
        functools.partial(_attn_kernel, n_head=n_head, hd=hd,
                          t_valid=T, t_padded=Tp, with_qk=return_qk),
        out_shape=out_shape,
        grid_spec=pltpu.PrefetchScalarGridSpec(
            num_scalar_prefetch=0,
            grid=(B, Tp // Tq, n_head),
            in_specs=[
                pl.BlockSpec((1, 1, Tq, hd), lambda b, t, h: (b, h, t, 0)),       # q tile
                pl.BlockSpec((1, n_head, Tp, hd), lambda b, t, h: (b, 0, 0, 0)),  # K (resident / batch)
                pl.BlockSpec((1, n_head, Tp, hd), lambda b, t, h: (b, 0, 0, 0)),  # V (resident / batch)
                pl.BlockSpec((D, D), lambda b, t, h: (0, 0)),                     # Wo (flat, K = D)
                pl.BlockSpec((1, D), lambda b, t, h: (0, 0)),                     # bo
            ],
            out_specs=out_specs,
            scratch_shapes=[pltpu.VMEM((Tq, D), cdt)],   # per-head wv concat scratch
        ),
        compiler_params=pltpu.CompilerParams(
            dimension_semantics=("parallel", "parallel", "arbitrary"),
            vmem_limit_bytes=vmem_bytes),
    )(q, k, v, wo, bo)

    if return_qk:
        out_p, qk_p = results
        out = out_p[:, :T, :] if Tp != T else out_p
        qk = qk_p[:, :, :T, :T] if Tp != T else qk_p
        return out, qk
    out_p = results
    return out_p[:, :T, :] if Tp != T else out_p


def _reference(x, params, n_head):
    """Pure-JAX reproduction of the PyTorch forward, for a sanity check."""
    B, T, D = x.shape
    hd = D // n_head
    scale = hd ** (-0.25)
    q = x @ params["wq"].T + params["bq"]
    k = x @ params["wk"].T
    v = x @ params["wv"].T + params["bv"]
    q = q.reshape(B, T, n_head, hd).transpose(0, 2, 1, 3) * scale
    k = k.reshape(B, T, n_head, hd).transpose(0, 2, 3, 1) * scale
    v = v.reshape(B, T, n_head, hd).transpose(0, 2, 1, 3)
    qk = (q @ k).astype(jnp.float32)
    w = jax.nn.softmax(qk, axis=-1).astype(x.dtype)
    wv = (w @ v).transpose(0, 2, 1, 3).reshape(B, T, D)
    out = wv @ params["wo"].T + params["bo"]
    return out, qk


if __name__ == "__main__":
    B, T, D, H = 2, 8, 32, 4
    key = jax.random.PRNGKey(0)
    ks = jax.random.split(key, 9)

    params = {
        "wq": jax.random.normal(ks[0], (D, D), jnp.float32) * 0.1,  # (out, in) torch layout
        "bq": jax.random.normal(ks[1], (D,), jnp.float32) * 0.1,
        "wk": jax.random.normal(ks[2], (D, D), jnp.float32) * 0.1,
        "wv": jax.random.normal(ks[3], (D, D), jnp.float32) * 0.1,
        "bv": jax.random.normal(ks[4], (D,), jnp.float32) * 0.1,
        "wo": jax.random.normal(ks[5], (D, D), jnp.float32) * 0.1,
        "bo": jax.random.normal(ks[6], (D,), jnp.float32) * 0.1,
    }
    x = jax.random.normal(ks[7], (B, T, D), jnp.float32)

    ref_out, ref_qk = _reference(x, params, H)

    # f32 path (T=8 exercises the pad-to-128 + key-masking path)
    out, qk = multi_head_attention(x, params, H)
    out, qk = jax.block_until_ready((out, qk))
    assert out.shape == (B, T, D) and qk.shape == (B, H, T, T)
    assert jnp.allclose(qk, ref_qk, atol=1e-4, rtol=1e-4)
    assert jnp.allclose(out, ref_out, atol=5e-3, rtol=5e-3)

    # qk writeback skipped (the biggest HBM saving flagged by the perf review)
    out_nq = jax.block_until_ready(multi_head_attention(x, params, H, return_qk=False))
    assert jnp.allclose(out_nq, ref_out, atol=5e-3, rtol=5e-3)

    # bf16 MXU fast path (f32 accumulation / softmax), loose check vs f32 reference
    out16, qk16 = multi_head_attention(x, params, H, compute_dtype=jnp.bfloat16)
    out16, qk16 = jax.block_until_ready((out16, qk16))
    assert jnp.allclose(out16.astype(jnp.float32), ref_out, atol=5e-2, rtol=5e-2)
    assert jnp.allclose(qk16.astype(jnp.float32), ref_qk, atol=5e-2, rtol=5e-2)

    # 128-multiple sequence (no padding / no masking branch)
    T2 = 128
    x2 = jax.random.normal(ks[8], (1, T2, D), jnp.float32)
    ref_out2, ref_qk2 = _reference(x2, params, H)
    out2, qk2 = jax.block_until_ready(multi_head_attention(x2, params, H))
    assert jnp.allclose(qk2, ref_qk2, atol=1e-3, rtol=1e-3)
    assert jnp.allclose(out2, ref_out2, atol=5e-3, rtol=5e-3)

    print("KERNEL_OK")
</pallas_src>

<mosaic_0001>
module attributes {stable_mosaic.version = 11 : i64} {
  func.func @_qkv_proj_kernel(%arg0: i32, %arg1: i32, %arg2: memref<1x128x32xf32, #tpu.memory_space<vmem>>, %arg3: memref<32x96xf32, #tpu.memory_space<vmem>>, %arg4: memref<1x96xf32, #tpu.memory_space<vmem>>, %arg5: memref<1x4x128x8xf32, #tpu.memory_space<vmem>>, %arg6: memref<1x4x128x8xf32, #tpu.memory_space<vmem>>, %arg7: memref<1x4x128x8xf32, #tpu.memory_space<vmem>>) attributes {dimension_semantics = [#tpu.dimension_semantics<parallel>, #tpu.dimension_semantics<parallel>], iteration_bounds = array<i64: 2, 1>, scalar_prefetch = 0 : i64, scratch_operands = 0 : i64, tpu.core_type = #tpu.core_type<tc>, window_params = [{transform_indices = @transform_0, window_bounds = array<i64: 1, 128, 32>}, {pipeline_mode = #tpu.pipeline_mode<synchronous>, transform_indices = @transform_1, window_bounds = array<i64: 32, 96>}, {pipeline_mode = #tpu.pipeline_mode<synchronous>, transform_indices = @transform_2, window_bounds = array<i64: 1, 96>}, {transform_indices = @transform_3, window_bounds = array<i64: 1, 4, 128, 8>}, {transform_indices = @transform_4, window_bounds = array<i64: 1, 4, 128, 8>}, {transform_indices = @transform_5, window_bounds = array<i64: 1, 4, 128, 8>}]} {
    %c0 = arith.constant 0 : index
    %c0_0 = arith.constant 0 : index
    %c0_1 = arith.constant 0 : index
    %0 = vector.load %arg2[%c0, %c0_0, %c0_1] : memref<1x128x32xf32, #tpu.memory_space<vmem>>, vector<1x128x32xf32>
    %1 = vector.shape_cast %0 : vector<1x128x32xf32> to vector<128x32xf32>
    %c0_2 = arith.constant 0 : index
    %c0_3 = arith.constant 0 : index
    %2 = vector.load %arg3[%c0_2, %c0_3] : memref<32x96xf32, #tpu.memory_space<vmem>>, vector<32x96xf32>
    %cst = arith.constant dense<0.000000e+00> : vector<128x96xf32>
    %3 = tpu.matmul %1, %2, %cst {dimension_numbers = #tpu.dot_dimension_numbers<[1], [0], [0], [1], [0, 0, 1, 1], [], []>} : vector<128x32xf32>, vector<32x96xf32>, vector<128x96xf32> -> vector<128x96xf32>
    %c0_4 = arith.constant 0 : index
    %c0_5 = arith.constant 0 : index
    %4 = vector.load %arg4[%c0_4, %c0_5] : memref<1x96xf32, #tpu.memory_space<vmem>>, vector<1x96xf32>
    %5 = vector.broadcast %4 : vector<1x96xf32> to vector<128x96xf32>
    %6 = arith.addf %3, %5 : vector<128x96xf32>
    %7 = vector.extract_strided_slice %6 {offsets = [0, 0], sizes = [128, 8], strides = [1, 1]} : vector<128x96xf32> to vector<128x8xf32>
    %c0_6 = arith.constant 0 : index
    %c0_7 = arith.constant 0 : index
    %c0_8 = arith.constant 0 : index
    %c0_9 = arith.constant 0 : index
    %8 = vector.load %arg5[%c0_6, %c0_7, %c0_8, %c0_9] : memref<1x4x128x8xf32, #tpu.memory_space<vmem>>, vector<1x1x128x8xf32>
    %9 = vector.shape_cast %8 : vector<1x1x128x8xf32> to vector<128x8xf32>
    %10 = vector.shape_cast %7 : vector<128x8xf32> to vector<1x1x128x8xf32>
    tpu.vector_store %arg5[%c0_6, %c0_7, %c0_8, %c0_9], %10 {strides = array<i32>} : memref<1x4x128x8xf32, #tpu.memory_space<vmem>>, vector<1x1x128x8xf32>,
    %11 = vector.extract_strided_slice %6 {offsets = [0, 32], sizes = [128, 8], strides = [1, 1]} : vector<128x96xf32> to vector<128x8xf32>
    %c0_10 = arith.constant 0 : index
    %c0_11 = arith.constant 0 : index
    %c0_12 = arith.constant 0 : index
    %c0_13 = arith.constant 0 : index
    %12 = vector.load %arg6[%c0_10, %c0_11, %c0_12, %c0_13] : memref<1x4x128x8xf32, #tpu.memory_space<vmem>>, vector<1x1x128x8xf32>
    %13 = vector.shape_cast %12 : vector<1x1x128x8xf32> to vector<128x8xf32>
    %14 = vector.shape_cast %11 : vector<128x8xf32> to vector<1x1x128x8xf32>
    tpu.vector_store %arg6[%c0_10, %c0_11, %c0_12, %c0_13], %14 {strides = array<i32>} : memref<1x4x128x8xf32, #tpu.memory_space<vmem>>, vector<1x1x128x8xf32>,
    %15 = vector.extract_strided_slice %6 {offsets = [0, 64], sizes = [128, 8], strides = [1, 1]} : vector<128x96xf32> to vector<128x8xf32>
    %c0_14 = arith.constant 0 : index
    %c0_15 = arith.constant 0 : index
    %c0_16 = arith.constant 0 : index
    %c0_17 = arith.constant 0 : index
    %16 = vector.load %arg7[%c0_14, %c0_15, %c0_16, %c0_17] : memref<1x4x128x8xf32, #tpu.memory_space<vmem>>, vector<1x1x128x8xf32>
    %17 = vector.shape_cast %16 : vector<1x1x128x8xf32> to vector<128x8xf32>
    %18 = vector.shape_cast %15 : vector<128x8xf32> to vector<1x1x128x8xf32>
    tpu.vector_store %arg7[%c0_14, %c0_15, %c0_16, %c0_17], %18 {strides = array<i32>} : memref<1x4x128x8xf32, #tpu.memory_space<vmem>>, vector<1x1x128x8xf32>,
    %19 = vector.extract_strided_slice %6 {offsets = [0, 8], sizes = [128, 8], strides = [1, 1]} : vector<128x96xf32> to vector<128x8xf32>
    %c0_18 = arith.constant 0 : index
    %c1 = arith.constant 1 : index
    %c0_19 = arith.constant 0 : index
    %c0_20 = arith.constant 0 : index
    %20 = vector.load %arg5[%c0_18, %c1, %c0_19, %c0_20] : memref<1x4x128x8xf32, #tpu.memory_space<vmem>>, vector<1x1x128x8xf32>
    %21 = vector.shape_cast %20 : vector<1x1x128x8xf32> to vector<128x8xf32>
    %22 = vector.shape_cast %19 : vector<128x8xf32> to vector<1x1x128x8xf32>
    tpu.vector_store %arg5[%c0_18, %c1, %c0_19, %c0_20], %22 {strides = array<i32>} : memref<1x4x128x8xf32, #tpu.memory_space<vmem>>, vector<1x1x128x8xf32>,
    %23 = vector.extract_strided_slice %6 {offsets = [0, 40], sizes = [128, 8], strides = [1, 1]} : vector<128x96xf32> to vector<128x8xf32>
    %c0_21 = arith.constant 0 : index
    %c1_22 = arith.constant 1 : index
    %c0_23 = arith.constant 0 : index
    %c0_24 = arith.constant 0 : index
    %24 = vector.load %arg6[%c0_21, %c1_22, %c0_23, %c0_24] : memref<1x4x128x8xf32, #tpu.memory_space<vmem>>, vector<1x1x128x8xf32>
    %25 = vector.shape_cast %24 : vector<1x1x128x8xf32> to vector<128x8xf32>
    %26 = vector.shape_cast %23 : vector<128x8xf32> to vector<1x1x128x8xf32>
    tpu.vector_store %arg6[%c0_21, %c1_22, %c0_23, %c0_24], %26 {strides = array<i32>} : memref<1x4x128x8xf32, #tpu.memory_space<vmem>>, vector<1x1x128x8xf32>,
    %27 = vector.extract_strided_slice %6 {offsets = [0, 72], sizes = [128, 8], strides = [1, 1]} : vector<128x96xf32> to vector<128x8xf32>
    %c0_25 = arith.constant 0 : index
    %c1_26 = arith.constant 1 : index
    %c0_27 = arith.constant 0 : index
    %c0_28 = arith.constant 0 : index
    %28 = vector.load %arg7[%c0_25, %c1_26, %c0_27, %c0_28] : memref<1x4x128x8xf32, #tpu.memory_space<vmem>>, vector<1x1x128x8xf32>
    %29 = vector.shape_cast %28 : vector<1x1x128x8xf32> to vector<128x8xf32>
    %30 = vector.shape_cast %27 : vector<128x8xf32> to vector<1x1x128x8xf32>
    tpu.vector_store %arg7[%c0_25, %c1_26, %c0_27, %c0_28], %30 {strides = array<i32>} : memref<1x4x128x8xf32, #tpu.memory_space<vmem>>, vector<1x1x128x8xf32>,
    %31 = vector.extract_strided_slice %6 {offsets = [0, 16], sizes = [128, 8], strides = [1, 1]} : vector<128x96xf32> to vector<128x8xf32>
    %c0_29 = arith.constant 0 : index
    %c2 = arith.constant 2 : index
    %c0_30 = arith.constant 0 : index
    %c0_31 = arith.constant 0 : index
    %32 = vector.load %arg5[%c0_29, %c2, %c0_30, %c0_31] : memref<1x4x128x8xf32, #tpu.memory_space<vmem>>, vector<1x1x128x8xf32>
    %33 = vector.shape_cast %32 : vector<1x1x128x8xf32> to vector<128x8xf32>
    %34 = vector.shape_cast %31 : vector<128x8xf32> to vector<1x1x128x8xf32>
    tpu.vector_store %arg5[%c0_29, %c2, %c0_30, %c0_31], %34 {strides = array<i32>} : memref<1x4x128x8xf32, #tpu.memory_space<vmem>>, vector<1x1x128x8xf32>,
    %35 = vector.extract_strided_slice %6 {offsets = [0, 48], sizes = [128, 8], strides = [1, 1]} : vector<128x96xf32> to vector<128x8xf32>
    %c0_32 = arith.constant 0 : index
    %c2_33 = arith.constant 2 : index
    %c0_34 = arith.constant 0 : index
    %c0_35 = arith.constant 0 : index
    %36 = vector.load %arg6[%c0_32, %c2_33, %c0_34, %c0_35] : memref<1x4x128x8xf32, #tpu.memory_space<vmem>>, vector<1x1x128x8xf32>
    %37 = vector.shape_cast %36 : vector<1x1x128x8xf32> to vector<128x8xf32>
    %38 = vector.shape_cast %35 : vector<128x8xf32> to vector<1x1x128x8xf32>
    tpu.vector_store %arg6[%c0_32, %c2_33, %c0_34, %c0_35], %38 {strides = array<i32>} : memref<1x4x128x8xf32, #tpu.memory_space<vmem>>, vector<1x1x128x8xf32>,
    %39 = vector.extract_strided_slice %6 {offsets = [0, 80], sizes = [128, 8], strides = [1, 1]} : vector<128x96xf32> to vector<128x8xf32>
    %c0_36 = arith.constant 0 : index
    %c2_37 = arith.constant 2 : index
    %c0_38 = arith.constant 0 : index
    %c0_39 = arith.constant 0 : index
    %40 = vector.load %arg7[%c0_36, %c2_37, %c0_38, %c0_39] : memref<1x4x128x8xf32, #tpu.memory_space<vmem>>, vector<1x1x128x8xf32>
    %41 = vector.shape_cast %40 : vector<1x1x128x8xf32> to vector<128x8xf32>
    %42 = vector.shape_cast %39 : vector<128x8xf32> to vector<1x1x128x8xf32>
    tpu.vector_store %arg7[%c0_36, %c2_37, %c0_38, %c0_39], %42 {strides = array<i32>} : memref<1x4x128x8xf32, #tpu.memory_space<vmem>>, vector<1x1x128x8xf32>,
    %43 = vector.extract_strided_slice %6 {offsets = [0, 24], sizes = [128, 8], strides = [1, 1]} : vector<128x96xf32> to vector<128x8xf32>
    %c0_40 = arith.constant 0 : index
    %c3 = arith.constant 3 : index
    %c0_41 = arith.constant 0 : index
    %c0_42 = arith.constant 0 : index
    %44 = vector.load %arg5[%c0_40, %c3, %c0_41, %c0_42] : memref<1x4x128x8xf32, #tpu.memory_space<vmem>>, vector<1x1x128x8xf32>
    %45 = vector.shape_cast %44 : vector<1x1x128x8xf32> to vector<128x8xf32>
    %46 = vector.shape_cast %43 : vector<128x8xf32> to vector<1x1x128x8xf32>
    tpu.vector_store %arg5[%c0_40, %c3, %c0_41, %c0_42], %46 {strides = array<i32>} : memref<1x4x128x8xf32, #tpu.memory_space<vmem>>, vector<1x1x128x8xf32>,
    %47 = vector.extract_strided_slice %6 {offsets = [0, 56], sizes = [128, 8], strides = [1, 1]} : vector<128x96xf32> to vector<128x8xf32>
    %c0_43 = arith.constant 0 : index
    %c3_44 = arith.constant 3 : index
    %c0_45 = arith.constant 0 : index
    %c0_46 = arith.constant 0 : index
    %48 = vector.load %arg6[%c0_43, %c3_44, %c0_45, %c0_46] : memref<1x4x128x8xf32, #tpu.memory_space<vmem>>, vector<1x1x128x8xf32>
    %49 = vector.shape_cast %48 : vector<1x1x128x8xf32> to vector<128x8xf32>
    %50 = vector.shape_cast %47 : vector<128x8xf32> to vector<1x1x128x8xf32>
    tpu.vector_store %arg6[%c0_43, %c3_44, %c0_45, %c0_46], %50 {strides = array<i32>} : memref<1x4x128x8xf32, #tpu.memory_space<vmem>>, vector<1x1x128x8xf32>,
    %51 = vector.extract_strided_slice %6 {offsets = [0, 88], sizes = [128, 8], strides = [1, 1]} : vector<128x96xf32> to vector<128x8xf32>
    %c0_47 = arith.constant 0 : index
    %c3_48 = arith.constant 3 : index
    %c0_49 = arith.constant 0 : index
    %c0_50 = arith.constant 0 : index
    %52 = vector.load %arg7[%c0_47, %c3_48, %c0_49, %c0_50] : memref<1x4x128x8xf32, #tpu.memory_space<vmem>>, vector<1x1x128x8xf32>
    %53 = vector.shape_cast %52 : vector<1x1x128x8xf32> to vector<128x8xf32>
    %54 = vector.shape_cast %51 : vector<128x8xf32> to vector<1x1x128x8xf32>
    tpu.vector_store %arg7[%c0_47, %c3_48, %c0_49, %c0_50], %54 {strides = array<i32>} : memref<1x4x128x8xf32, #tpu.memory_space<vmem>>, vector<1x1x128x8xf32>,
    return
  }
  func.func @transform_0(%arg0: i32, %arg1: i32) -> (i32, i32, i32) {
    %c0_i32 = arith.constant 0 : i32
    %c0_i32_0 = arith.constant 0 : i32
    return %arg0, %arg1, %c0_i32 : i32, i32, i32
  }
  func.func @transform_1(%arg0: i32, %arg1: i32) -> (i32, i32) {
    %c0_i32 = arith.constant 0 : i32
    %c0_i32_0 = arith.constant 0 : i32
    %c0_i32_1 = arith.constant 0 : i32
    return %c0_i32, %c0_i32_0 : i32, i32
  }
  func.func @transform_2(%arg0: i32, %arg1: i32) -> (i32, i32) {
    %c0_i32 = arith.constant 0 : i32
    %c0_i32_0 = arith.constant 0 : i32
    %c0_i32_1 = arith.constant 0 : i32
    return %c0_i32, %c0_i32_0 : i32, i32
  }
  func.func @transform_3(%arg0: i32, %arg1: i32) -> (i32, i32, i32, i32) {
    %c0_i32 = arith.constant 0 : i32
    %c0_i32_0 = arith.constant 0 : i32
    %c0_i32_1 = arith.constant 0 : i32
    return %arg0, %c0_i32, %arg1, %c0_i32_0 : i32, i32, i32, i32
  }
  func.func @transform_4(%arg0: i32, %arg1: i32) -> (i32, i32, i32, i32) {
    %c0_i32 = arith.constant 0 : i32
    %c0_i32_0 = arith.constant 0 : i32
    %c0_i32_1 = arith.constant 0 : i32
    return %arg0, %c0_i32, %arg1, %c0_i32_0 : i32, i32, i32, i32
  }
  func.func @transform_5(%arg0: i32, %arg1: i32) -> (i32, i32, i32, i32) {
    %c0_i32 = arith.constant 0 : i32
    %c0_i32_0 = arith.constant 0 : i32
    %c0_i32_1 = arith.constant 0 : i32
    return %arg0, %c0_i32, %arg1, %c0_i32_0 : i32, i32, i32, i32
  }
}

</mosaic_0001>

<bundles_post_ra>
// kernel: tpu_custom_call.1
= control target key start
LH: loop header
LB: loop body
LE: loop exit
PB: predicated region body
PF: predicated region fallthrough
CT: control target
= control target key end

     0   :  { %s1809_s18 = smov 0   ;;  %s1811_s19 = smov 0   ;;  %s2714_s0 = inlined_call_operand.vmem [shape: f32[2,128,32], index: 0, kind: input, shape index: {}]   ;;  %s2715_s1 = inlined_call_operand.vmem [shape: f32[32,96], index: 1, kind: input, shape index: {}]   ;;  %s2716_s2 = inlined_call_operand.vmem [shape: f32[1,96], index: 2, kind: input, shape index: {}]   ;;  %s2717_s3 = inlined_call_operand.vmem [shape: f32[2,4,128,8], index: 3, kind: output, shape index: {0}]   ;;  %s2718_s4 = inlined_call_operand.vmem [shape: f32[2,4,128,8], index: 4, kind: output, shape index: {1}]   ;;  %s2719_s5 = inlined_call_operand.vmem [shape: f32[2,4,128,8], index: 5, kind: output, shape index: {2}]  }
   0x1   :  { %s1813_s20 = smov 0  }
   0x2 LB: > { %s28_s21 = sadd.s32 1, %s1762_s19  ;;  %p1469_p0 = scmp.ge.s32.totalorder %s1766_s20, 1  ;;  %s1766_s20 = sphi %s1813_s20, %s16_s20   ;;  %s1762_s19 = sphi %s1811_s19, %s2721_s19   ;;  %s1758_s18 = sphi %s1809_s18, %s2720_s18  }
   0x3   : > { %p30_p1 = scmp.ge.s32.totalorder %s28_s21, 2  ;;  %p217_p2 = scmp.lt.s32.totalorder %s1766_s20, 3 }
   0x5   : > { %s2723_s21 = smov (%p30_p1, %s28_s21), 0  ;;  %p218_p3 = pnand %p1469_p0, %p217_p2 }
   0x6   : > { %v327_v0 = vld [vmem:[%s2715_s1] sm:$0xff] (!%p218_p3)  ;;  %v328_v1 = vld [vmem:[%s2715_s1 + $0x8] sm:$0xff] (!%p218_p3)  ;;  %v329_v2 = vld [vmem:[%s2715_s1 + $0x10] sm:$0xff] (!%p218_p3)  ;;  %p272_p4 = scmp.lt.s32.totalorder (!%p218_p3), %s1758_s18, 1  ;;  %vm338_vm0 = vcmask (!%p218_p3), 261120   ;;  %vm532_vm1 = vcmask (!%p218_p3), 64512  }
   0x7   : > { %221 = sbr.rel (%p218_p3) target bundleno = 698 (0x2ba), region = 32  ;;  %v1697_v3 = vpack.c.bf16 (!%p218_p3), %v328_v1, %v327_v0  ;;  %v330_v4 = vld [vmem:[%s2715_s1 + $0x18] sm:$0xff] (!%p218_p3)  ;;  %v1885_v22 = vld [vmem:[%s2716_s2] ss:$0 sm:$0xff] (!%p218_p3)  ;;  %s1768_s15 = smov (!%p218_p3), 96  }
   0x8   : > { %v1701_v5 = vpack.c.bf16 (!%p218_p3), %v330_v4, %v329_v2  ;;  %s1769_s16 = smov (!%p218_p3), 64   ;;  %s1770_s17 = smov (!%p218_p3), 120  }
   0x9   : > { %1698 = vmatprep.subr.bf16.mxu0 (!%p218_p3), %v1697_v3  ;;  %1705 = vmatprep.subr.bf16.mxu1 (!%p218_p3), %v1697_v3  ;;  %s1772_s22 = smov (!%p218_p3), 56   ;;  %s1773_s23 = smov (!%p218_p3), 112  }
   0xa   : > { %1700 = vmatpush3.bf16.msra.mxu0 (!%p218_p3), %v1697_v3  ;;  %1707 = vmatpush3.bf16.msra.mxu1 (!%p218_p3), %v1697_v3  ;;  %s1774_s24 = smov (!%p218_p3), 80   ;;  %s1775_s25 = smov (!%p218_p3), 48  }
   0xb   : > { %1702 = vmatprep.subr.bf16.mxu0 (!%p218_p3), %v1701_v5  ;;  %1706 = vmatprep.subr.bf16.mxu1 (!%p218_p3), %v1701_v5  ;;  %s1776_s7 = smov (!%p218_p3), 104  }
   0xe   : > { %s2725_s18 = smov (!%p272_p4, %s1758_s18), 1  ;;  %1704 = vmatpush3.bf16.msra.mxu0 %v1701_v5  ;;  %1708 = vmatpush3.bf16.msra.mxu1 %v1701_v5 }
   0xf   : > { %s1641_s30 = sshll.u32 %s2725_s18, 7  ;;  %s1880_s9 = sshll.u32 %s2725_s18, 9 }
  0x10   : > { %s1845_s8 = scalar_lea.vmem %s2714_s0, %s1641_s30  ;;  %s1891_s14 = scalar_lea.vmem %s2717_s3, %s1880_s9 }
  0x11   : > { %v311_v6 = vld [vmem:[%s1845_s8] sm:$0xff]  ;;  %v312_v8 = vld [vmem:[%s1845_s8 + $0x8] sm:$0xff]  ;;  %v313_v10 = vld [vmem:[%s1845_s8 + $0x10] sm:$0xff]  ;;  %s1771_s18 = smov 88   ;;  %s2109_s28 = scalar_lea.vmem %s2718_s4, %s1880_s9 }
  0x12   : > { %v319_v7 = vld [vmem:[%s1845_s8 + $0x40] sm:$0xff]  ;;  %1673 = vmatprep.mubr.msk.f32.mxu0 %vm338_vm0, %v311_v6  ;;  %v320_v9 = vld [vmem:[%s1845_s8 + $0x48] sm:$0xff]  ;;  %v321_v11 = vld [vmem:[%s1845_s8 + $0x50] sm:$0xff]  ;;  %s2123_s6 = scalar_lea.vmem %s2719_s5, %s1880_s9  ;;  %s1778_s9 = smov 40  }
  0x13   : > { %1685 = vmatprep.mubr.msk.f32.mxu1 %vm338_vm0, %v319_v7  ;;  %1674 = vmatmul.mubr.msk.f32.vlgmr.msra.gmra.mrb[0].mxu0 %vm338_vm0, %v312_v8  ;;  %v314_v12 = vld [vmem:[%s1845_s8 + $0x18] sm:$0xff]  ;;  %v315_v14 = vld [vmem:[%s1845_s8 + $0x20] sm:$0xff]  ;;  %v316_v16 = vld [vmem:[%s1845_s8 + $0x28] sm:$0xff] }
  0x14   : > { %1686 = vmatmul.mubr.msk.f32.vlgmr.msra.gmra.mrb[0].mxu1 %vm338_vm0, %v320_v9  ;;  %1676 = vmatprep.mubr.msk.f32.mxu0 %vm338_vm0, %v313_v10  ;;  %v322_v13 = vld [vmem:[%s1845_s8 + $0x58] sm:$0xff]  ;;  %v323_v15 = vld [vmem:[%s1845_s8 + $0x60] sm:$0xff]  ;;  %v324_v17 = vld [vmem:[%s1845_s8 + $0x68] sm:$0xff] }
  0x15   : > { %1688 = vmatprep.mubr.msk.f32.mxu1 %vm338_vm0, %v321_v11  ;;  %v317_v18 = vld [vmem:[%s1845_s8 + $0x30] sm:$0xff]  ;;  %v318_v20 = vld [vmem:[%s1845_s8 + $0x38] sm:$0xff] }
  0x16   : > { %v325_v19 = vld [vmem:[%s1845_s8 + $0x70] sm:$0xff]  ;;  %v326_v21 = vld [vmem:[%s1845_s8 + $0x78] sm:$0xff]  ;;  %s1777_s8 = smov 72  }
  0x17   : > { %1677 = vmatmul.mubr.msk.f32.gmra.mrb[2].mxu0 %vm338_vm0, %v314_v12 }
  0x18   : > { %1689 = vmatmul.mubr.msk.f32.gmra.mrb[2].mxu1 %vm338_vm0, %v322_v13  ;;  %1679 = vmatprep.mubr.msk.f32.mxu0 %vm338_vm0, %v315_v14 }
  0x19   : > { %1691 = vmatprep.mubr.msk.f32.mxu1 %vm338_vm0, %v323_v15 }
  0x1b   : > { %1680 = vmatmul.mubr.msk.f32.gmra.mrb[4].mxu0 %vm338_vm0, %v316_v16 }
  0x1c   : > { %1692 = vmatmul.mubr.msk.f32.gmra.mrb[4].mxu1 %vm338_vm0, %v324_v17  ;;  %1682 = vmatprep.mubr.msk.f32.mxu0 %vm338_vm0, %v317_v18 }
  0x1d   : > { %1694 = vmatprep.mubr.msk.f32.mxu1 %vm338_vm0, %v325_v19 }
  0x1f   : > { %1683 = vmatmul.mubr.msk.f32.gmra.mrb[6].mxu0 %vm338_vm0, %v318_v20 }
  0x20   : > { %1695 = vmatmul.mubr.msk.f32.gmra.mrb[6].mxu1 %vm338_vm0, %v326_v21 }
  0xe6   : > { %v1675_v23 = vpop.f32.mrb[0].mxu0 }
  0xe7   : > { %v1687_v24 = vpop.f32.mrb[0].mxu1  ;;  %v1894_v25 = vadd.f32 %v1675_v23, %v1885_v22  ;;  %v453_v27 = vpop.f32.mrb[1].mxu0 }
  0xe8   : > { %v1897_v26 = vadd.f32 %v1687_v24, %v1885_v22  ;;  %v493_v28 = vpop.f32.mrb[1].mxu1  ;;  %v1900_v29 = vadd.f32 %v1885_v22, %v453_v27 }
  0xe9   : > { %v1903_v30 = vadd.f32 %v1885_v22, %v493_v28  ;;  %534 = vst.msk [vmem:[%s1891_s14 + $0x8] sm:$0xff] %vm532_vm1, %v1894_v25  ;;  %567 = vrot.lane.b32.xlu0 %v1894_v25, %s1768_s15 }
  0xea   : > { %542 = vst.msk [vmem:[%s1891_s14 + $0x48] sm:$0xff] %vm532_vm1, %v1897_v26  ;;  %583 = vrot.lane.b32.xlu1 %v1897_v26, %s1768_s15  ;;  %533 = vst.msk [vmem:[%s1891_s14] sm:$0xff] %vm532_vm1, %v1900_v29  ;;  %v1678_v31 = vpop.f32.mrb[2].mxu0 }
  0xeb   : > { %541 = vst.msk [vmem:[%s1891_s14 + $0x40] sm:$0xff] %vm532_vm1, %v1903_v30  ;;  %v1690_v32 = vpop.f32.mrb[2].mxu1  ;;  %v1922_v33 = vadd.f32 %v1678_v31, %v1885_v22  ;;  %v463_v34 = vpop.f32.mrb[3].mxu0 }
  0xec   : > { %v1925_v35 = vadd.f32 %v1690_v32, %v1885_v22  ;;  %v503_v36 = vpop.f32.mrb[3].mxu1  ;;  %v1928_v37 = vadd.f32 %v1885_v22, %v463_v34 }
  0xed   : > { %v1931_v38 = vadd.f32 %v1885_v22, %v503_v36  ;;  %565 = vrot.lane.b32.xlu0 %v1900_v29, %s1768_s15  ;;  %536 = vst.msk [vmem:[%s1891_s14 + $0x18] sm:$0xff] %vm532_vm1, %v1922_v33 }
  0xee   : > { %631 = vrot.lane.b32.xlu1 %v1894_v25, %s1769_s16  ;;  %544 = vst.msk [vmem:[%s1891_s14 + $0x58] sm:$0xff] %vm532_vm1, %v1925_v35  ;;  %535 = vst.msk [vmem:[%s1891_s14 + $0x10] sm:$0xff] %vm532_vm1, %v1928_v37  ;;  %v1681_v39 = vpop.f32.mrb[4].mxu0 }
  0xef   : > { %543 = vst.msk [vmem:[%s1891_s14 + $0x50] sm:$0xff] %vm532_vm1, %v1931_v38  ;;  %v1693_v40 = vpop.f32.mrb[4].mxu1  ;;  %v1950_v41 = vadd.f32 %v1681_v39, %v1885_v22  ;;  %v473_v42 = vpop.f32.mrb[5].mxu0 }
  0xf0   : > { %v1953_v43 = vadd.f32 %v1693_v40, %v1885_v22  ;;  %v513_v44 = vpop.f32.mrb[5].mxu1  ;;  %v1956_v45 = vadd.f32 %v1885_v22, %v473_v42 }
  0xf1   : > { %v1959_v46 = vadd.f32 %v1885_v22, %v513_v44  ;;  %581 = vrot.lane.b32.xlu0 %v1903_v30, %s1768_s15  ;;  %538 = vst.msk [vmem:[%s1891_s14 + $0x28] sm:$0xff] %vm532_vm1, %v1950_v41 }
  0xf2   : > { %647 = vrot.lane.b32.xlu1 %v1897_v26, %s1769_s16  ;;  %546 = vst.msk [vmem:[%s1891_s14 + $0x68] sm:$0xff] %vm532_vm1, %v1953_v43  ;;  %537 = vst.msk [vmem:[%s1891_s14 + $0x20] sm:$0xff] %vm532_vm1, %v1956_v45  ;;  %v1684_v47 = vpop.f32.mrb[6].mxu0 }
  0xf3   : > { %545 = vst.msk [vmem:[%s1891_s14 + $0x60] sm:$0xff] %vm532_vm1, %v1959_v46  ;;  %v2018_v48 = vadd.f32 %v1684_v47, %v1885_v22  ;;  %v483_v49 = vpop.f32.mrb[7].mxu0  ;;  %v1696_v51 = vpop.f32.mrb[6].mxu1 }
  0xf4   : > { %v2021_v50 = vadd.f32 %v1885_v22, %v483_v49  ;;  %v2034_v52 = vadd.f32 %v1696_v51, %v1885_v22  ;;  %v523_v53 = vpop.f32.mrb[7].mxu1 }
  0xf5   : > { %629 = vrot.lane.b32.xlu0 %v1900_v29, %s1769_s16  ;;  %540 = vst.msk [vmem:[%s1891_s14 + $0x38] sm:$0xff] %vm532_vm1, %v2018_v48  ;;  %v2037_v54 = vadd.f32 %v1885_v22, %v523_v53 }
  0xf6   : > { %695 = vrot.lane.b32.xlu1 %v1894_v25, %s1770_s17  ;;  %539 = vst.msk [vmem:[%s1891_s14 + $0x30] sm:$0xff] %vm532_vm1, %v2021_v50  ;;  %548 = vst.msk [vmem:[%s1891_s14 + $0x78] sm:$0xff] %vm532_vm1, %v2034_v52 }
  0xf7   : > { %547 = vst.msk [vmem:[%s1891_s14 + $0x70] sm:$0xff] %vm532_vm1, %v2037_v54 }
  0xf9   : > { %645 = vrot.lane.b32.xlu0 %v1903_v30, %s1769_s16 }
  0xfa   : > { %711 = vrot.lane.b32.xlu1 %v1897_v26, %s1770_s17 }
  0xfd   : > { %693 = vrot.lane.b32.xlu0 %v1900_v29, %s1770_s17 }
  0xfe   : > { %760 = vrot.lane.b32.xlu1 %v1894_v25, %s1771_s18 }
 0x101   : > { %709 = vrot.lane.b32.xlu0 %v1903_v30, %s1770_s17 }
 0x102   : > { %776 = vrot.lane.b32.xlu1 %v1897_v26, %s1771_s18 }
 0x105   : > { %758 = vrot.lane.b32.xlu0 %v1900_v29, %s1771_s18 }
 0x106   : > { %825 = vrot.lane.b32.xlu1 %v1894_v25, %s1772_s22 }
 0x109   : > { %774 = vrot.lane.b32.xlu0 %v1903_v30, %s1771_s18 }
 0x10a   : > { %841 = vrot.lane.b32.xlu1 %v1897_v26, %s1772_s22 }
 0x10d   : > { %823 = vrot.lane.b32.xlu0 %v1900_v29, %s1772_s22 }
 0x10e   : > { %890 = vrot.lane.b32.xlu1 %v1894_v25, %s1773_s23 }
 0x111   : > { %839 = vrot.lane.b32.xlu0 %v1903_v30, %s1772_s22 }
 0x112   : > { %906 = vrot.lane.b32.xlu1 %v1897_v26, %s1773_s23 }
 0x115   : > { %888 = vrot.lane.b32.xlu0 %v1900_v29, %s1773_s23 }
 0x116   : > { %955 = vrot.lane.b32.xlu1 %v1894_v25, %s1774_s24 }
 0x119   : > { %904 = vrot.lane.b32.xlu0 %v1903_v30, %s1773_s23 }
 0x11a   : > { %971 = vrot.lane.b32.xlu1 %v1897_v26, %s1774_s24 }
 0x11d   : > { %953 = vrot.lane.b32.xlu0 %v1900_v29, %s1774_s24 }
 0x11e   : > { %1020 = vrot.lane.b32.xlu1 %v1894_v25, %s1775_s25 }
 0x121   : > { %969 = vrot.lane.b32.xlu0 %v1903_v30, %s1774_s24 }
 0x122   : > { %571 = vrot.lane.b32.xlu1 %v1922_v33, %s1768_s15 }
 0x125   : > { %1018 = vrot.lane.b32.xlu0 %v1900_v29, %s1775_s25 }
 0x126   : > { %587 = vrot.lane.b32.xlu1 %v1925_v35, %s1768_s15 }
 0x129   : > { %585 = vrot.lane.b32.xlu0 %v1931_v38, %s1768_s15 }
 0x12a   : > { %635 = vrot.lane.b32.xlu1 %v1922_v33, %s1769_s16 }
 0x12d   : > { %633 = vrot.lane.b32.xlu0 %v1928_v37, %s1769_s16 }
 0x12e   : > { %651 = vrot.lane.b32.xlu1 %v1925_v35, %s1769_s16 }
 0x131   : > { %649 = vrot.lane.b32.xlu0 %v1931_v38, %s1769_s16 }
 0x132   : > { %699 = vrot.lane.b32.xlu1 %v1922_v33, %s1770_s17 }
 0x135   : > { %697 = vrot.lane.b32.xlu0 %v1928_v37, %s1770_s17 }
 0x136   : > { %715 = vrot.lane.b32.xlu1 %v1925_v35, %s1770_s17 }
 0x139   : > { %713 = vrot.lane.b32.xlu0 %v1931_v38, %s1770_s17 }
 0x13a   : > { %764 = vrot.lane.b32.xlu1 %v1922_v33, %s1771_s18 }
 0x13d   : > { %762 = vrot.lane.b32.xlu0 %v1928_v37, %s1771_s18 }
 0x13e   : > { %780 = vrot.lane.b32.xlu1 %v1925_v35, %s1771_s18 }
 0x141   : > { %778 = vrot.lane.b32.xlu0 %v1931_v38, %s1771_s18 }
 0x142   : > { %829 = vrot.lane.b32.xlu1 %v1922_v33, %s1772_s22 }
 0x145   : > { %827 = vrot.lane.b32.xlu0 %v1928_v37, %s1772_s22 }
 0x146   : > { %845 = vrot.lane.b32.xlu1 %v1925_v35, %s1772_s22 }
 0x149   : > { %843 = vrot.lane.b32.xlu0 %v1931_v38, %s1772_s22 }
 0x14a   : > { %894 = vrot.lane.b32.xlu1 %v1922_v33, %s1773_s23 }
 0x14d   : > { %892 = vrot.lane.b32.xlu0 %v1928_v37, %s1773_s23 }
 0x14e   : > { %910 = vrot.lane.b32.xlu1 %v1925_v35, %s1773_s23 }
 0x151   : > { %908 = vrot.lane.b32.xlu0 %v1931_v38, %s1773_s23 }
 0x152   : > { %959 = vrot.lane.b32.xlu1 %v1922_v33, %s1774_s24 }
 0x155   : > { %957 = vrot.lane.b32.xlu0 %v1928_v37, %s1774_s24 }
 0x156   : > { %975 = vrot.lane.b32.xlu1 %v1925_v35, %s1774_s24 }
 0x159   : > { %973 = vrot.lane.b32.xlu0 %v1931_v38, %s1774_s24 }
 0x15a   : > { %1024 = vrot.lane.b32.xlu1 %v1922_v33, %s1775_s25 }
 0x15b   : > { %v568_v56 = vpop.permute.xlu0 %567 }
 0x15c   : > { %v584_v55 = vpop.permute.xlu1 %583  ;;  %614 = vst.msk [vmem:[%s2109_s28 + $0x8] sm:$0xff] %vm532_vm1, %v568_v56 }
 0x15d   : > { %622 = vst.msk [vmem:[%s2109_s28 + $0x48] sm:$0xff] %vm532_vm1, %v584_v55  ;;  %1022 = vrot.lane.b32.xlu0 %v1928_v37, %s1775_s25 }
 0x15e   : > { %569 = vrot.lane.b32.xlu1 %v1928_v37, %s1768_s15 }
 0x15f   : > { %v566_v58 = vpop.permute.xlu0 %565 }
 0x160   : > { %v632_v57 = vpop.permute.xlu1 %631  ;;  %613 = vst.msk [vmem:[%s2109_s28] sm:$0xff] %vm532_vm1, %v566_v58 }
 0x161   : > { %678 = vst.msk [vmem:[%s2123_s6 + $0x8] sm:$0xff] %vm532_vm1, %v632_v57  ;;  %573 = vrot.lane.b32.xlu0 %v1956_v45, %s1768_s15 }
 0x162   : > { %575 = vrot.lane.b32.xlu1 %v1950_v41, %s1768_s15 }
 0x163   : > { %v582_v60 = vpop.permute.xlu0 %581 }
 0x164   : > { %v648_v59 = vpop.permute.xlu1 %647  ;;  %621 = vst.msk [vmem:[%s2109_s28 + $0x40] sm:$0xff] %vm532_vm1, %v582_v60 }
 0x165   : > { %686 = vst.msk [vmem:[%s2123_s6 + $0x48] sm:$0xff] %vm532_vm1, %v648_v59  ;;  %589 = vrot.lane.b32.xlu0 %v1959_v46, %s1768_s15 }
 0x166   : > { %591 = vrot.lane.b32.xlu1 %v1953_v43, %s1768_s15 }
 0x167   : > { %v630_v62 = vpop.permute.xlu0 %629 }
 0x168   : > { %v696_v61 = vpop.permute.xlu1 %695  ;;  %677 = vst.msk [vmem:[%s2123_s6] sm:$0xff] %vm532_vm1, %v630_v62 }
 0x169   : > { %1496 = vst.msk [vmem:[%s1891_s14 + $0x88] sm:$0xff] %vm532_vm1, %v696_v61  ;;  %637 = vrot.lane.b32.xlu0 %v1956_v45, %s1769_s16 }
 0x16a   : > { %639 = vrot.lane.b32.xlu1 %v1950_v41, %s1769_s16 }
 0x16b   : > { %v646_v0 = vpop.permute.xlu0 %645 }
 0x16c   : > { %v712_v63 = vpop.permute.xlu1 %711  ;;  %685 = vst.msk [vmem:[%s2123_s6 + $0x40] sm:$0xff] %vm532_vm1, %v646_v0 }
 0x16d   : > { %1504 = vst.msk [vmem:[%s1891_s14 + $0xc8] sm:$0xff] %vm532_vm1, %v712_v63  ;;  %653 = vrot.lane.b32.xlu0 %v1959_v46, %s1769_s16 }
 0x16e   : > { %655 = vrot.lane.b32.xlu1 %v1953_v43, %s1769_s16 }
 0x16f   : > { %v694_v2 = vpop.permute.xlu0 %693 }
 0x170   : > { %v761_v1 = vpop.permute.xlu1 %760  ;;  %1495 = vst.msk [vmem:[%s1891_s14 + $0x80] sm:$0xff] %vm532_vm1, %v694_v2 }
 0x171   : > { %1512 = vst.msk [vmem:[%s2109_s28 + $0x88] sm:$0xff] %vm532_vm1, %v761_v1  ;;  %701 = vrot.lane.b32.xlu0 %v1956_v45, %s1770_s17 }
 0x172   : > { %703 = vrot.lane.b32.xlu1 %v1950_v41, %s1770_s17 }
 0x173   : > { %v710_v4 = vpop.permute.xlu0 %709 }
 0x174   : > { %v777_v3 = vpop.permute.xlu1 %776  ;;  %1503 = vst.msk [vmem:[%s1891_s14 + $0xc0] sm:$0xff] %vm532_vm1, %v710_v4 }
 0x175   : > { %1520 = vst.msk [vmem:[%s2109_s28 + $0xc8] sm:$0xff] %vm532_vm1, %v777_v3  ;;  %717 = vrot.lane.b32.xlu0 %v1959_v46, %s1770_s17 }
 0x176   : > { %719 = vrot.lane.b32.xlu1 %v1953_v43, %s1770_s17 }
 0x177   : > { %v759_v6 = vpop.permute.xlu0 %758 }
 0x178   : > { %v826_v5 = vpop.permute.xlu1 %825  ;;  %1511 = vst.msk [vmem:[%s2109_s28 + $0x80] sm:$0xff] %vm532_vm1, %v759_v6 }
 0x179   : > { %1528 = vst.msk [vmem:[%s2123_s6 + $0x88] sm:$0xff] %vm532_vm1, %v826_v5  ;;  %766 = vrot.lane.b32.xlu0 %v1956_v45, %s1771_s18 }
 0x17a   : > { %768 = vrot.lane.b32.xlu1 %v1950_v41, %s1771_s18 }
 0x17b   : > { %v775_v8 = vpop.permute.xlu0 %774 }
 0x17c   : > { %v842_v7 = vpop.permute.xlu1 %841  ;;  %1519 = vst.msk [vmem:[%s2109_s28 + $0xc0] sm:$0xff] %vm532_vm1, %v775_v8 }
 0x17d   : > { %1536 = vst.msk [vmem:[%s2123_s6 + $0xc8] sm:$0xff] %vm532_vm1, %v842_v7  ;;  %782 = vrot.lane.b32.xlu0 %v1959_v46, %s1771_s18 }
 0x17e   : > { %784 = vrot.lane.b32.xlu1 %v1953_v43, %s1771_s18 }
 0x17f   : > { %v824_v10 = vpop.permute.xlu0 %823 }
 0x180   : > { %v891_v9 = vpop.permute.xlu1 %890  ;;  %1527 = vst.msk [vmem:[%s2123_s6 + $0x80] sm:$0xff] %vm532_vm1, %v824_v10 }
 0x181   : > { %1544 = vst.msk [vmem:[%s1891_s14 + $0x108] sm:$0xff] %vm532_vm1, %v891_v9  ;;  %831 = vrot.lane.b32.xlu0 %v1956_v45, %s1772_s22 }
 0x182   : > { %833 = vrot.lane.b32.xlu1 %v1950_v41, %s1772_s22 }
 0x183   : > { %v840_v12 = vpop.permute.xlu0 %839 }
 0x184   : > { %v907_v11 = vpop.permute.xlu1 %906  ;;  %1535 = vst.msk [vmem:[%s2123_s6 + $0xc0] sm:$0xff] %vm532_vm1, %v840_v12 }
 0x185   : > { %1552 = vst.msk [vmem:[%s1891_s14 + $0x148] sm:$0xff] %vm532_vm1, %v907_v11  ;;  %847 = vrot.lane.b32.xlu0 %v1959_v46, %s1772_s22 }
 0x186   : > { %849 = vrot.lane.b32.xlu1 %v1953_v43, %s1772_s22 }
 0x187   : > { %v889_v14 = vpop.permute.xlu0 %888 }
 0x188   : > { %v956_v13 = vpop.permute.xlu1 %955  ;;  %1543 = vst.msk [vmem:[%s1891_s14 + $0x100] sm:$0xff] %vm532_vm1, %v889_v14 }
 0x189   : > { %1560 = vst.msk [vmem:[%s2109_s28 + $0x108] sm:$0xff] %vm532_vm1, %v956_v13  ;;  %896 = vrot.lane.b32.xlu0 %v1956_v45, %s1773_s23 }
 0x18a   : > { %898 = vrot.lane.b32.xlu1 %v1950_v41, %s1773_s23 }
 0x18b   : > { %v905_v16 = vpop.permute.xlu0 %904 }
 0x18c   : > { %v972_v15 = vpop.permute.xlu1 %971  ;;  %1551 = vst.msk [vmem:[%s1891_s14 + $0x140] sm:$0xff] %vm532_vm1, %v905_v16 }
 0x18d   : > { %1568 = vst.msk [vmem:[%s2109_s28 + $0x148] sm:$0xff] %vm532_vm1, %v972_v15  ;;  %912 = vrot.lane.b32.xlu0 %v1959_v46, %s1773_s23 }
 0x18e   : > { %914 = vrot.lane.b32.xlu1 %v1953_v43, %s1773_s23 }
 0x18f   : > { %v954_v18 = vpop.permute.xlu0 %953 }
 0x190   : > { %v1021_v17 = vpop.permute.xlu1 %1020  ;;  %1559 = vst.msk [vmem:[%s2109_s28 + $0x100] sm:$0xff] %vm532_vm1, %v954_v18 }
 0x191   : > { %1576 = vst.msk [vmem:[%s2123_s6 + $0x108] sm:$0xff] %vm532_vm1, %v1021_v17  ;;  %961 = vrot.lane.b32.xlu0 %v1956_v45, %s1774_s24 }
 0x192   : > { %963 = vrot.lane.b32.xlu1 %v1950_v41, %s1774_s24 }
 0x193   : > { %v970_v20 = vpop.permute.xlu0 %969 }
 0x194   : > { %v572_v19 = vpop.permute.xlu1 %571  ;;  %1567 = vst.msk [vmem:[%s2109_s28 + $0x140] sm:$0xff] %vm532_vm1, %v970_v20 }
 0x195   : > { %616 = vst.msk [vmem:[%s2109_s28 + $0x18] sm:$0xff] %vm532_vm1, %v572_v19  ;;  %977 = vrot.lane.b32.xlu0 %v1959_v46, %s1774_s24 }
 0x196   : > { %979 = vrot.lane.b32.xlu1 %v1953_v43, %s1774_s24 }
 0x197   : > { %v1019_v22 = vpop.permute.xlu0 %1018 }
 0x198   : > { %v588_v21 = vpop.permute.xlu1 %587  ;;  %1575 = vst.msk [vmem:[%s2123_s6 + $0x100] sm:$0xff] %vm532_vm1, %v1019_v22 }
 0x199   : > { %624 = vst.msk [vmem:[%s2109_s28 + $0x58] sm:$0xff] %vm532_vm1, %v588_v21  ;;  %1026 = vrot.lane.b32.xlu0 %v1956_v45, %s1775_s25 }
 0x19a   : > { %1028 = vrot.lane.b32.xlu1 %v1950_v41, %s1775_s25 }
 0x19b   : > { %v586_v24 = vpop.permute.xlu0 %585 }
 0x19c   : > { %v636_v23 = vpop.permute.xlu1 %635  ;;  %623 = vst.msk [vmem:[%s2109_s28 + $0x50] sm:$0xff] %vm532_vm1, %v586_v24 }
 0x19d   : > { %680 = vst.msk [vmem:[%s2123_s6 + $0x18] sm:$0xff] %vm532_vm1, %v636_v23  ;;  %577 = vrot.lane.b32.xlu0 %v2021_v50, %s1768_s15 }
 0x19e   : > { %579 = vrot.lane.b32.xlu1 %v2018_v48, %s1768_s15 }
 0x19f   : > { %v634_v28 = vpop.permute.xlu0 %633 }
 0x1a0   : > { %v652_v27 = vpop.permute.xlu1 %651  ;;  %679 = vst.msk [vmem:[%s2123_s6 + $0x10] sm:$0xff] %vm532_vm1, %v634_v28 }
 0x1a1   : > { %688 = vst.msk [vmem:[%s2123_s6 + $0x58] sm:$0xff] %vm532_vm1, %v652_v27  ;;  %593 = vrot.lane.b32.xlu0 %v2037_v54, %s1768_s15 }
 0x1a2   : > { %595 = vrot.lane.b32.xlu1 %v2034_v52, %s1768_s15 }
 0x1a3   : > { %v650_v32 = vpop.permute.xlu0 %649 }
 0x1a4   : > { %v700_v31 = vpop.permute.xlu1 %699  ;;  %687 = vst.msk [vmem:[%s2123_s6 + $0x50] sm:$0xff] %vm532_vm1, %v650_v32 }
 0x1a5   : > { %1498 = vst.msk [vmem:[%s1891_s14 + $0x98] sm:$0xff] %vm532_vm1, %v700_v31  ;;  %641 = vrot.lane.b32.xlu0 %v2021_v50, %s1769_s16 }
 0x1a6   : > { %643 = vrot.lane.b32.xlu1 %v2018_v48, %s1769_s16 }
 0x1a7   : > { %v698_v36 = vpop.permute.xlu0 %697 }
 0x1a8   : > { %v716_v34 = vpop.permute.xlu1 %715  ;;  %1497 = vst.msk [vmem:[%s1891_s14 + $0x90] sm:$0xff] %vm532_vm1, %v698_v36 }
 0x1a9   : > { %1506 = vst.msk [vmem:[%s1891_s14 + $0xd8] sm:$0xff] %vm532_vm1, %v716_v34  ;;  %657 = vrot.lane.b32.xlu0 %v2037_v54, %s1769_s16 }
 0x1aa   : > { %659 = vrot.lane.b32.xlu1 %v2034_v52, %s1769_s16 }
 0x1ab   : > { %v714_v40 = vpop.permute.xlu0 %713 }
 0x1ac   : > { %v765_v39 = vpop.permute.xlu1 %764  ;;  %1505 = vst.msk [vmem:[%s1891_s14 + $0xd0] sm:$0xff] %vm532_vm1, %v714_v40 }
 0x1ad   : > { %1514 = vst.msk [vmem:[%s2109_s28 + $0x98] sm:$0xff] %vm532_vm1, %v765_v39  ;;  %705 = vrot.lane.b32.xlu0 %v2021_v50, %s1770_s17 }
 0x1ae   : > { %707 = vrot.lane.b32.xlu1 %v2018_v48, %s1770_s17 }
 0x1af   : > { %v763_v44 = vpop.permute.xlu0 %762 }
 0x1b0   : > { %v781_v42 = vpop.permute.xlu1 %780  ;;  %1513 = vst.msk [vmem:[%s2109_s28 + $0x90] sm:$0xff] %vm532_vm1, %v763_v44 }
 0x1b1   : > { %1522 = vst.msk [vmem:[%s2109_s28 + $0xd8] sm:$0xff] %vm532_vm1, %v781_v42  ;;  %721 = vrot.lane.b32.xlu0 %v2037_v54, %s1770_s17 }
 0x1b2   : > { %723 = vrot.lane.b32.xlu1 %v2034_v52, %s1770_s17 }
 0x1b3   : > { %v779_v49 = vpop.permute.xlu0 %778 }
 0x1b4   : > { %v830_v47 = vpop.permute.xlu1 %829  ;;  %1521 = vst.msk [vmem:[%s2109_s28 + $0xd0] sm:$0xff] %vm532_vm1, %v779_v49 }
 0x1b5   : > { %1530 = vst.msk [vmem:[%s2123_s6 + $0x98] sm:$0xff] %vm532_vm1, %v830_v47  ;;  %770 = vrot.lane.b32.xlu0 %v2021_v50, %s1771_s18 }
 0x1b6   : > { %772 = vrot.lane.b32.xlu1 %v2018_v48, %s1771_s18 }
 0x1b7   : > { %v828_v53 = vpop.permute.xlu0 %827 }
 0x1b8   : > { %v846_v51 = vpop.permute.xlu1 %845  ;;  %1529 = vst.msk [vmem:[%s2123_s6 + $0x90] sm:$0xff] %vm532_vm1, %v828_v53 }
 0x1b9   : > { %1538 = vst.msk [vmem:[%s2123_s6 + $0xd8] sm:$0xff] %vm532_vm1, %v846_v51  ;;  %786 = vrot.lane.b32.xlu0 %v2037_v54, %s1771_s18 }
 0x1ba   : > { %788 = vrot.lane.b32.xlu1 %v2034_v52, %s1771_s18 }
 0x1bb   : > { %v844_v56 = vpop.permute.xlu0 %843 }
 0x1bc   : > { %v895_v55 = vpop.permute.xlu1 %894  ;;  %1537 = vst.msk [vmem:[%s2123_s6 + $0xd0] sm:$0xff] %vm532_vm1, %v844_v56 }
 0x1bd   : > { %1546 = vst.msk [vmem:[%s1891_s14 + $0x118] sm:$0xff] %vm532_vm1, %v895_v55  ;;  %835 = vrot.lane.b32.xlu0 %v2021_v50, %s1772_s22 }
 0x1be   : > { %837 = vrot.lane.b32.xlu1 %v2018_v48, %s1772_s22 }
 0x1bf   : > { %v893_v58 = vpop.permute.xlu0 %892 }
 0x1c0   : > { %v911_v57 = vpop.permute.xlu1 %910  ;;  %1545 = vst.msk [vmem:[%s1891_s14 + $0x110] sm:$0xff] %vm532_vm1, %v893_v58 }
 0x1c1   : > { %1554 = vst.msk [vmem:[%s1891_s14 + $0x158] sm:$0xff] %vm532_vm1, %v911_v57  ;;  %851 = vrot.lane.b32.xlu0 %v2037_v54, %s1772_s22 }
 0x1c2   : > { %853 = vrot.lane.b32.xlu1 %v2034_v52, %s1772_s22 }
 0x1c3   : > { %v909_v60 = vpop.permute.xlu0 %908 }
 0x1c4   : > { %v960_v59 = vpop.permute.xlu1 %959  ;;  %1553 = vst.msk [vmem:[%s1891_s14 + $0x150] sm:$0xff] %vm532_vm1, %v909_v60 }
 0x1c5   : > { %1562 = vst.msk [vmem:[%s2109_s28 + $0x118] sm:$0xff] %vm532_vm1, %v960_v59  ;;  %900 = vrot.lane.b32.xlu0 %v2021_v50, %s1773_s23 }
 0x1c6   : > { %902 = vrot.lane.b32.xlu1 %v2018_v48, %s1773_s23 }
 0x1c7   : > { %v958_v62 = vpop.permute.xlu0 %957 }
 0x1c8   : > { %v976_v61 = vpop.permute.xlu1 %975  ;;  %1561 = vst.msk [vmem:[%s2109_s28 + $0x110] sm:$0xff] %vm532_vm1, %v958_v62 }
 0x1c9   : > { %1570 = vst.msk [vmem:[%s2109_s28 + $0x158] sm:$0xff] %vm532_vm1, %v976_v61  ;;  %916 = vrot.lane.b32.xlu0 %v2037_v54, %s1773_s23 }
 0x1ca   : > { %918 = vrot.lane.b32.xlu1 %v2034_v52, %s1773_s23 }
 0x1cb   : > { %v974_v0 = vpop.permute.xlu0 %973 }
 0x1cc   : > { %v1025_v63 = vpop.permute.xlu1 %1024  ;;  %1569 = vst.msk [vmem:[%s2109_s28 + $0x150] sm:$0xff] %vm532_vm1, %v974_v0 }
 0x1cd   : > { %1578 = vst.msk [vmem:[%s2123_s6 + $0x118] sm:$0xff] %vm532_vm1, %v1025_v63  ;;  %965 = vrot.lane.b32.xlu0 %v2021_v50, %s1774_s24 }
 0x1ce   : > { %967 = vrot.lane.b32.xlu1 %v2018_v48, %s1774_s24 }
 0x1cf   : > { %v1023_v2 = vpop.permute.xlu0 %1022 }
 0x1d0   : > { %v570_v1 = vpop.permute.xlu1 %569  ;;  %1577 = vst.msk [vmem:[%s2123_s6 + $0x110] sm:$0xff] %vm532_vm1, %v1023_v2 }
 0x1d1   : > { %615 = vst.msk [vmem:[%s2109_s28 + $0x10] sm:$0xff] %vm532_vm1, %v570_v1  ;;  %981 = vrot.lane.b32.xlu0 %v2037_v54, %s1774_s24 }
 0x1d2   : > { %983 = vrot.lane.b32.xlu1 %v2034_v52, %s1774_s24 }
 0x1d3   : > { %v574_v4 = vpop.permute.xlu0 %573 }
 0x1d4   : > { %v576_v3 = vpop.permute.xlu1 %575  ;;  %617 = vst.msk [vmem:[%s2109_s28 + $0x20] sm:$0xff] %vm532_vm1, %v574_v4 }
 0x1d5   : > { %618 = vst.msk [vmem:[%s2109_s28 + $0x28] sm:$0xff] %vm532_vm1, %v576_v3  ;;  %1030 = vrot.lane.b32.xlu0 %v2021_v50, %s1775_s25 }
 0x1d6   : > { %1032 = vrot.lane.b32.xlu1 %v2018_v48, %s1775_s25 }
 0x1d7   : > { %v590_v6 = vpop.permute.xlu0 %589 }
 0x1d8   : > { %v592_v5 = vpop.permute.xlu1 %591  ;;  %625 = vst.msk [vmem:[%s2109_s28 + $0x60] sm:$0xff] %vm532_vm1, %v590_v6 }
 0x1d9   : > { %626 = vst.msk [vmem:[%s2109_s28 + $0x68] sm:$0xff] %vm532_vm1, %v592_v5  ;;  %1034 = vrot.lane.b32.xlu0 %v1903_v30, %s1775_s25 }
 0x1da   : > { %1036 = vrot.lane.b32.xlu1 %v1897_v26, %s1775_s25 }
 0x1db   : > { %v638_v8 = vpop.permute.xlu0 %637 }
 0x1dc   : > { %v640_v7 = vpop.permute.xlu1 %639  ;;  %681 = vst.msk [vmem:[%s2123_s6 + $0x20] sm:$0xff] %vm532_vm1, %v638_v8 }
 0x1dd   : > { %682 = vst.msk [vmem:[%s2123_s6 + $0x28] sm:$0xff] %vm532_vm1, %v640_v7  ;;  %1038 = vrot.lane.b32.xlu0 %v1931_v38, %s1775_s25 }
 0x1de   : > { %1040 = vrot.lane.b32.xlu1 %v1925_v35, %s1775_s25 }
 0x1df   : > { %v654_v10 = vpop.permute.xlu0 %653 }
 0x1e0   : > { %v656_v9 = vpop.permute.xlu1 %655  ;;  %689 = vst.msk [vmem:[%s2123_s6 + $0x60] sm:$0xff] %vm532_vm1, %v654_v10 }
 0x1e1   : > { %690 = vst.msk [vmem:[%s2123_s6 + $0x68] sm:$0xff] %vm532_vm1, %v656_v9  ;;  %1042 = vrot.lane.b32.xlu0 %v1959_v46, %s1775_s25 }
 0x1e2   : > { %1044 = vrot.lane.b32.xlu1 %v1953_v43, %s1775_s25 }
 0x1e3   : > { %v702_v12 = vpop.permute.xlu0 %701 }
 0x1e4   : > { %v704_v11 = vpop.permute.xlu1 %703  ;;  %1499 = vst.msk [vmem:[%s1891_s14 + $0xa0] sm:$0xff] %vm532_vm1, %v702_v12 }
 0x1e5   : > { %1500 = vst.msk [vmem:[%s1891_s14 + $0xa8] sm:$0xff] %vm532_vm1, %v704_v11  ;;  %1046 = vrot.lane.b32.xlu0 %v2037_v54, %s1775_s25 }
 0x1e6   : > { %1048 = vrot.lane.b32.xlu1 %v2034_v52, %s1775_s25 }
 0x1e7   : > { %v718_v14 = vpop.permute.xlu0 %717 }
 0x1e8   : > { %v720_v13 = vpop.permute.xlu1 %719  ;;  %1507 = vst.msk [vmem:[%s1891_s14 + $0xe0] sm:$0xff] %vm532_vm1, %v718_v14 }
 0x1e9   : > { %1508 = vst.msk [vmem:[%s1891_s14 + $0xe8] sm:$0xff] %vm532_vm1, %v720_v13  ;;  %1083 = vrot.lane.b32.xlu0 %v1900_v29, %s1776_s7 }
 0x1ea   : > { %1085 = vrot.lane.b32.xlu1 %v1894_v25, %s1776_s7 }
 0x1eb   : > { %v767_v16 = vpop.permute.xlu0 %766 }
 0x1ec   : > { %v769_v15 = vpop.permute.xlu1 %768  ;;  %1515 = vst.msk [vmem:[%s2109_s28 + $0xa0] sm:$0xff] %vm532_vm1, %v767_v16 }
 0x1ed   : > { %1516 = vst.msk [vmem:[%s2109_s28 + $0xa8] sm:$0xff] %vm532_vm1, %v769_v15  ;;  %1087 = vrot.lane.b32.xlu0 %v1928_v37, %s1776_s7 }
 0x1ee   : > { %1089 = vrot.lane.b32.xlu1 %v1922_v33, %s1776_s7 }
 0x1ef   : > { %v783_v18 = vpop.permute.xlu0 %782 }
 0x1f0   : > { %v785_v17 = vpop.permute.xlu1 %784  ;;  %1523 = vst.msk [vmem:[%s2109_s28 + $0xe0] sm:$0xff] %vm532_vm1, %v783_v18 }
 0x1f1   : > { %1524 = vst.msk [vmem:[%s2109_s28 + $0xe8] sm:$0xff] %vm532_vm1, %v785_v17  ;;  %1091 = vrot.lane.b32.xlu0 %v1956_v45, %s1776_s7 }
 0x1f2   : > { %1093 = vrot.lane.b32.xlu1 %v1950_v41, %s1776_s7 }
 0x1f3   : > { %v832_v20 = vpop.permute.xlu0 %831 }
 0x1f4   : > { %v834_v19 = vpop.permute.xlu1 %833  ;;  %1531 = vst.msk [vmem:[%s2123_s6 + $0xa0] sm:$0xff] %vm532_vm1, %v832_v20 }
 0x1f5   : > { %1532 = vst.msk [vmem:[%s2123_s6 + $0xa8] sm:$0xff] %vm532_vm1, %v834_v19  ;;  %1095 = vrot.lane.b32.xlu0 %v2021_v50, %s1776_s7 }
 0x1f6   : > { %1097 = vrot.lane.b32.xlu1 %v2018_v48, %s1776_s7 }
 0x1f7   : > { %v848_v22 = vpop.permute.xlu0 %847 }
 0x1f8   : > { %v850_v21 = vpop.permute.xlu1 %849  ;;  %1539 = vst.msk [vmem:[%s2123_s6 + $0xe0] sm:$0xff] %vm532_vm1, %v848_v22 }
 0x1f9   : > { %1540 = vst.msk [vmem:[%s2123_s6 + $0xe8] sm:$0xff] %vm532_vm1, %v850_v21  ;;  %1099 = vrot.lane.b32.xlu0 %v1903_v30, %s1776_s7 }
 0x1fa   : > { %1101 = vrot.lane.b32.xlu1 %v1897_v26, %s1776_s7 }
 0x1fb   : > { %v897_v24 = vpop.permute.xlu0 %896 }
 0x1fc   : > { %v899_v23 = vpop.permute.xlu1 %898  ;;  %1547 = vst.msk [vmem:[%s1891_s14 + $0x120] sm:$0xff] %vm532_vm1, %v897_v24 }
 0x1fd   : > { %1548 = vst.msk [vmem:[%s1891_s14 + $0x128] sm:$0xff] %vm532_vm1, %v899_v23  ;;  %1103 = vrot.lane.b32.xlu0 %v1931_v38, %s1776_s7 }
 0x1fe   : > { %1105 = vrot.lane.b32.xlu1 %v1925_v35, %s1776_s7 }
 0x1ff   : > { %v913_v28 = vpop.permute.xlu0 %912 }
 0x200   : > { %v915_v27 = vpop.permute.xlu1 %914  ;;  %1555 = vst.msk [vmem:[%s1891_s14 + $0x160] sm:$0xff] %vm532_vm1, %v913_v28 }
 0x201   : > { %1556 = vst.msk [vmem:[%s1891_s14 + $0x168] sm:$0xff] %vm532_vm1, %v915_v27  ;;  %1107 = vrot.lane.b32.xlu0 %v1959_v46, %s1776_s7 }
 0x202   : > { %1109 = vrot.lane.b32.xlu1 %v1953_v43, %s1776_s7 }
 0x203   : > { %v962_v32 = vpop.permute.xlu0 %961 }
 0x204   : > { %v964_v31 = vpop.permute.xlu1 %963  ;;  %1563 = vst.msk [vmem:[%s2109_s28 + $0x120] sm:$0xff] %vm532_vm1, %v962_v32 }
 0x205   : > { %1564 = vst.msk [vmem:[%s2109_s28 + $0x128] sm:$0xff] %vm532_vm1, %v964_v31  ;;  %1111 = vrot.lane.b32.xlu0 %v2037_v54, %s1776_s7 }
 0x206   : > { %1113 = vrot.lane.b32.xlu1 %v2034_v52, %s1776_s7 }
 0x207   : > { %v978_v36 = vpop.permute.xlu0 %977 }
 0x208   : > { %v980_v34 = vpop.permute.xlu1 %979  ;;  %1571 = vst.msk [vmem:[%s2109_s28 + $0x160] sm:$0xff] %vm532_vm1, %v978_v36 }
 0x209   : > { %1572 = vst.msk [vmem:[%s2109_s28 + $0x168] sm:$0xff] %vm532_vm1, %v980_v34  ;;  %1148 = vrot.lane.b32.xlu0 %v1900_v29, %s1777_s8 }
 0x20a   : > { %1150 = vrot.lane.b32.xlu1 %v1894_v25, %s1777_s8 }
 0x20b   : > { %v1027_v40 = vpop.permute.xlu0 %1026 }
 0x20c   : > { %v1029_v39 = vpop.permute.xlu1 %1028  ;;  %1579 = vst.msk [vmem:[%s2123_s6 + $0x120] sm:$0xff] %vm532_vm1, %v1027_v40 }
 0x20d   : > { %1580 = vst.msk [vmem:[%s2123_s6 + $0x128] sm:$0xff] %vm532_vm1, %v1029_v39  ;;  %1152 = vrot.lane.b32.xlu0 %v1928_v37, %s1777_s8 }
 0x20e   : > { %1154 = vrot.lane.b32.xlu1 %v1922_v33, %s1777_s8 }
 0x20f   : > { %v578_v44 = vpop.permute.xlu0 %577 }
 0x210   : > { %v580_v42 = vpop.permute.xlu1 %579  ;;  %619 = vst.msk [vmem:[%s2109_s28 + $0x30] sm:$0xff] %vm532_vm1, %v578_v44 }
 0x211   : > { %620 = vst.msk [vmem:[%s2109_s28 + $0x38] sm:$0xff] %vm532_vm1, %v580_v42  ;;  %1156 = vrot.lane.b32.xlu0 %v1956_v45, %s1777_s8 }
 0x212   : > { %1158 = vrot.lane.b32.xlu1 %v1950_v41, %s1777_s8 }
 0x213   : > { %v594_v49 = vpop.permute.xlu0 %593 }
 0x214   : > { %v596_v47 = vpop.permute.xlu1 %595  ;;  %627 = vst.msk [vmem:[%s2109_s28 + $0x70] sm:$0xff] %vm532_vm1, %v594_v49 }
 0x215   : > { %628 = vst.msk [vmem:[%s2109_s28 + $0x78] sm:$0xff] %vm532_vm1, %v596_v47  ;;  %1160 = vrot.lane.b32.xlu0 %v2021_v50, %s1777_s8 }
 0x216   : > { %1162 = vrot.lane.b32.xlu1 %v2018_v48, %s1777_s8 }
 0x217   : > { %v642_v53 = vpop.permute.xlu0 %641 }
 0x218   : > { %v644_v51 = vpop.permute.xlu1 %643  ;;  %683 = vst.msk [vmem:[%s2123_s6 + $0x30] sm:$0xff] %vm532_vm1, %v642_v53 }
 0x219   : > { %684 = vst.msk [vmem:[%s2123_s6 + $0x38] sm:$0xff] %vm532_vm1, %v644_v51  ;;  %1164 = vrot.lane.b32.xlu0 %v1903_v30, %s1777_s8 }
 0x21a   : > { %1166 = vrot.lane.b32.xlu1 %v1897_v26, %s1777_s8 }
 0x21b   : > { %v658_v56 = vpop.permute.xlu0 %657 }
 0x21c   : > { %v660_v55 = vpop.permute.xlu1 %659  ;;  %691 = vst.msk [vmem:[%s2123_s6 + $0x70] sm:$0xff] %vm532_vm1, %v658_v56 }
 0x21d   : > { %692 = vst.msk [vmem:[%s2123_s6 + $0x78] sm:$0xff] %vm532_vm1, %v660_v55  ;;  %1168 = vrot.lane.b32.xlu0 %v1931_v38, %s1777_s8 }
 0x21e   : > { %1170 = vrot.lane.b32.xlu1 %v1925_v35, %s1777_s8 }
 0x21f   : > { %v706_v58 = vpop.permute.xlu0 %705 }
 0x220   : > { %v708_v57 = vpop.permute.xlu1 %707  ;;  %1501 = vst.msk [vmem:[%s1891_s14 + $0xb0] sm:$0xff] %vm532_vm1, %v706_v58 }
 0x221   : > { %1502 = vst.msk [vmem:[%s1891_s14 + $0xb8] sm:$0xff] %vm532_vm1, %v708_v57  ;;  %1172 = vrot.lane.b32.xlu0 %v1959_v46, %s1777_s8 }
 0x222   : > { %1174 = vrot.lane.b32.xlu1 %v1953_v43, %s1777_s8 }
 0x223   : > { %v722_v60 = vpop.permute.xlu0 %721 }
 0x224   : > { %v724_v59 = vpop.permute.xlu1 %723  ;;  %1509 = vst.msk [vmem:[%s1891_s14 + $0xf0] sm:$0xff] %vm532_vm1, %v722_v60 }
 0x225   : > { %1510 = vst.msk [vmem:[%s1891_s14 + $0xf8] sm:$0xff] %vm532_vm1, %v724_v59  ;;  %1176 = vrot.lane.b32.xlu0 %v2037_v54, %s1777_s8 }
 0x226   : > { %1178 = vrot.lane.b32.xlu1 %v2034_v52, %s1777_s8 }
 0x227   : > { %v771_v62 = vpop.permute.xlu0 %770 }
 0x228   : > { %v773_v61 = vpop.permute.xlu1 %772  ;;  %1517 = vst.msk [vmem:[%s2109_s28 + $0xb0] sm:$0xff] %vm532_vm1, %v771_v62 }
 0x229   : > { %1518 = vst.msk [vmem:[%s2109_s28 + $0xb8] sm:$0xff] %vm532_vm1, %v773_v61  ;;  %1213 = vrot.lane.b32.xlu0 %v1900_v29, %s1778_s9 }
 0x22a   : > { %1215 = vrot.lane.b32.xlu1 %v1894_v25, %s1778_s9 }
 0x22b   : > { %v787_v0 = vpop.permute.xlu0 %786 }
 0x22c   : > { %v789_v63 = vpop.permute.xlu1 %788  ;;  %1525 = vst.msk [vmem:[%s2109_s28 + $0xf0] sm:$0xff] %vm532_vm1, %v787_v0 }
 0x22d   : > { %1526 = vst.msk [vmem:[%s2109_s28 + $0xf8] sm:$0xff] %vm532_vm1, %v789_v63  ;;  %1217 = vrot.lane.b32.xlu0 %v1928_v37, %s1778_s9 }
 0x22e   : > { %1219 = vrot.lane.b32.xlu1 %v1922_v33, %s1778_s9 }
 0x22f   : > { %v836_v1 = vpop.permute.xlu0 %835 }
 0x230   : > { %v838_v25 = vpop.permute.xlu1 %837  ;;  %1533 = vst.msk [vmem:[%s2123_s6 + $0xb0] sm:$0xff] %vm532_vm1, %v836_v1 }
 0x231   : > { %1534 = vst.msk [vmem:[%s2123_s6 + $0xb8] sm:$0xff] %vm532_vm1, %v838_v25  ;;  %1221 = vrot.lane.b32.xlu0 %v1956_v45, %s1778_s9 }
 0x232   : > { %1223 = vrot.lane.b32.xlu1 %v1950_v41, %s1778_s9 }
 0x233   : > { %v852_v33 = vpop.permute.xlu0 %851 }
 0x234   : > { %v854_v29 = vpop.permute.xlu1 %853  ;;  %1541 = vst.msk [vmem:[%s2123_s6 + $0xf0] sm:$0xff] %vm532_vm1, %v852_v33 }
 0x235   : > { %1542 = vst.msk [vmem:[%s2123_s6 + $0xf8] sm:$0xff] %vm532_vm1, %v854_v29  ;;  %1225 = vrot.lane.b32.xlu0 %v2021_v50, %s1778_s9 }
 0x236   : > { %1227 = vrot.lane.b32.xlu1 %v2018_v48, %s1778_s9 }
 0x237   : > { %v901_v41 = vpop.permute.xlu0 %900 }
 0x238   : > { %v903_v37 = vpop.permute.xlu1 %902  ;;  %1549 = vst.msk [vmem:[%s1891_s14 + $0x130] sm:$0xff] %vm532_vm1, %v901_v41 }
 0x239   : > { %1550 = vst.msk [vmem:[%s1891_s14 + $0x138] sm:$0xff] %vm532_vm1, %v903_v37  ;;  %1229 = vrot.lane.b32.xlu0 %v1903_v30, %s1778_s9 }
 0x23a   : > { %1231 = vrot.lane.b32.xlu1 %v1897_v26, %s1778_s9 }
 0x23b   : > { %v917_v48 = vpop.permute.xlu0 %916 }
 0x23c   : > { %v919_v45 = vpop.permute.xlu1 %918  ;;  %1557 = vst.msk [vmem:[%s1891_s14 + $0x170] sm:$0xff] %vm532_vm1, %v917_v48 }
 0x23d   : > { %1558 = vst.msk [vmem:[%s1891_s14 + $0x178] sm:$0xff] %vm532_vm1, %v919_v45  ;;  %1233 = vrot.lane.b32.xlu0 %v1931_v38, %s1778_s9 }
 0x23e   : > { %1235 = vrot.lane.b32.xlu1 %v1925_v35, %s1778_s9 }
 0x23f   : > { %v966_v50 = vpop.permute.xlu0 %965 }
 0x240   : > { %v968_v26 = vpop.permute.xlu1 %967  ;;  %1565 = vst.msk [vmem:[%s2109_s28 + $0x130] sm:$0xff] %vm532_vm1, %v966_v50 }
 0x241   : > { %1566 = vst.msk [vmem:[%s2109_s28 + $0x138] sm:$0xff] %vm532_vm1, %v968_v26  ;;  %1237 = vrot.lane.b32.xlu0 %v1959_v46, %s1778_s9 }
 0x242   : > { %1239 = vrot.lane.b32.xlu1 %v1953_v43, %s1778_s9 }
 0x243   : > { %v982_v35 = vpop.permute.xlu0 %981 }
 0x244   : > { %v984_v30 = vpop.permute.xlu1 %983  ;;  %1573 = vst.msk [vmem:[%s2109_s28 + $0x170] sm:$0xff] %vm532_vm1, %v982_v35 }
 0x245   : > { %1574 = vst.msk [vmem:[%s2109_s28 + $0x178] sm:$0xff] %vm532_vm1, %v984_v30  ;;  %1241 = vrot.lane.b32.xlu0 %v2037_v54, %s1778_s9 }
 0x246   : > { %1243 = vrot.lane.b32.xlu1 %v2034_v52, %s1778_s9 }
 0x247   : > { %v1031_v43 = vpop.permute.xlu0 %1030 }
 0x248   : > { %v1033_v38 = vpop.permute.xlu1 %1032  ;;  %1581 = vst.msk [vmem:[%s2123_s6 + $0x130] sm:$0xff] %vm532_vm1, %v1031_v43 }
 0x249   : > { %1582 = vst.msk [vmem:[%s2123_s6 + $0x138] sm:$0xff] %vm532_vm1, %v1033_v38 }
 0x24b   : > { %v1035_v2 = vpop.permute.xlu0 %1034 }
 0x24c   : > { %v1037_v46 = vpop.permute.xlu1 %1036  ;;  %1583 = vst.msk [vmem:[%s2123_s6 + $0x140] sm:$0xff] %vm532_vm1, %v1035_v2 }
 0x24d   : > { %1584 = vst.msk [vmem:[%s2123_s6 + $0x148] sm:$0xff] %vm532_vm1, %v1037_v46 }
 0x24f   : > { %v1039_v3 = vpop.permute.xlu0 %1038 }
 0x250   : > { %v1041_v52 = vpop.permute.xlu1 %1040  ;;  %1585 = vst.msk [vmem:[%s2123_s6 + $0x150] sm:$0xff] %vm532_vm1, %v1039_v3 }
 0x251   : > { %1586 = vst.msk [vmem:[%s2123_s6 + $0x158] sm:$0xff] %vm532_vm1, %v1041_v52 }
 0x253   : > { %v1043_v4 = vpop.permute.xlu0 %1042 }
 0x254   : > { %v1045_v54 = vpop.permute.xlu1 %1044  ;;  %1587 = vst.msk [vmem:[%s2123_s6 + $0x160] sm:$0xff] %vm532_vm1, %v1043_v4 }
 0x255   : > { %1588 = vst.msk [vmem:[%s2123_s6 + $0x168] sm:$0xff] %vm532_vm1, %v1045_v54 }
 0x257   : > { %v1047_v6 = vpop.permute.xlu0 %1046 }
 0x258   : > { %v1049_v5 = vpop.permute.xlu1 %1048  ;;  %1589 = vst.msk [vmem:[%s2123_s6 + $0x170] sm:$0xff] %vm532_vm1, %v1047_v6 }
 0x259   : > { %1590 = vst.msk [vmem:[%s2123_s6 + $0x178] sm:$0xff] %vm532_vm1, %v1049_v5 }
 0x25b   : > { %v1084_v8 = vpop.permute.xlu0 %1083 }
 0x25c   : > { %v1086_v7 = vpop.permute.xlu1 %1085  ;;  %1591 = vst.msk [vmem:[%s1891_s14 + $0x180] sm:$0xff] %vm532_vm1, %v1084_v8 }
 0x25d   : > { %1592 = vst.msk [vmem:[%s1891_s14 + $0x188] sm:$0xff] %vm532_vm1, %v1086_v7 }
 0x25f   : > { %v1088_v10 = vpop.permute.xlu0 %1087 }
 0x260   : > { %v1090_v9 = vpop.permute.xlu1 %1089  ;;  %1593 = vst.msk [vmem:[%s1891_s14 + $0x190] sm:$0xff] %vm532_vm1, %v1088_v10 }
 0x261   : > { %1594 = vst.msk [vmem:[%s1891_s14 + $0x198] sm:$0xff] %vm532_vm1, %v1090_v9 }
 0x263   : > { %v1092_v12 = vpop.permute.xlu0 %1091 }
 0x264   : > { %v1094_v11 = vpop.permute.xlu1 %1093  ;;  %1595 = vst.msk [vmem:[%s1891_s14 + $0x1a0] sm:$0xff] %vm532_vm1, %v1092_v12 }
 0x265   : > { %1596 = vst.msk [vmem:[%s1891_s14 + $0x1a8] sm:$0xff] %vm532_vm1, %v1094_v11 }
 0x267   : > { %v1096_v14 = vpop.permute.xlu0 %1095 }
 0x268   : > { %v1098_v13 = vpop.permute.xlu1 %1097  ;;  %1597 = vst.msk [vmem:[%s1891_s14 + $0x1b0] sm:$0xff] %vm532_vm1, %v1096_v14 }
 0x269   : > { %1598 = vst.msk [vmem:[%s1891_s14 + $0x1b8] sm:$0xff] %vm532_vm1, %v1098_v13 }
 0x26b   : > { %v1100_v16 = vpop.permute.xlu0 %1099 }
 0x26c   : > { %v1102_v15 = vpop.permute.xlu1 %1101  ;;  %1599 = vst.msk [vmem:[%s1891_s14 + $0x1c0] sm:$0xff] %vm532_vm1, %v1100_v16 }
 0x26d   : > { %1600 = vst.msk [vmem:[%s1891_s14 + $0x1c8] sm:$0xff] %vm532_vm1, %v1102_v15 }
 0x26f   : > { %v1104_v18 = vpop.permute.xlu0 %1103 }
 0x270   : > { %v1106_v17 = vpop.permute.xlu1 %1105  ;;  %1601 = vst.msk [vmem:[%s1891_s14 + $0x1d0] sm:$0xff] %vm532_vm1, %v1104_v18 }
 0x271   : > { %1602 = vst.msk [vmem:[%s1891_s14 + $0x1d8] sm:$0xff] %vm532_vm1, %v1106_v17 }
 0x273   : > { %v1108_v20 = vpop.permute.xlu0 %1107 }
 0x274   : > { %v1110_v19 = vpop.permute.xlu1 %1109  ;;  %1603 = vst.msk [vmem:[%s1891_s14 + $0x1e0] sm:$0xff] %vm532_vm1, %v1108_v20 }
 0x275   : > { %1604 = vst.msk [vmem:[%s1891_s14 + $0x1e8] sm:$0xff] %vm532_vm1, %v1110_v19 }
 0x277   : > { %v1112_v22 = vpop.permute.xlu0 %1111 }
 0x278   : > { %v1114_v21 = vpop.permute.xlu1 %1113  ;;  %1605 = vst.msk [vmem:[%s1891_s14 + $0x1f0] sm:$0xff] %vm532_vm1, %v1112_v22 }
 0x279   : > { %1606 = vst.msk [vmem:[%s1891_s14 + $0x1f8] sm:$0xff] %vm532_vm1, %v1114_v21 }
 0x27b   : > { %v1149_v24 = vpop.permute.xlu0 %1148 }
 0x27c   : > { %v1151_v23 = vpop.permute.xlu1 %1150  ;;  %1607 = vst.msk [vmem:[%s2109_s28 + $0x180] sm:$0xff] %vm532_vm1, %v1149_v24 }
 0x27d   : > { %1608 = vst.msk [vmem:[%s2109_s28 + $0x188] sm:$0xff] %vm532_vm1, %v1151_v23 }
 0x27f   : > { %v1153_v28 = vpop.permute.xlu0 %1152 }
 0x280   : > { %v1155_v27 = vpop.permute.xlu1 %1154  ;;  %1609 = vst.msk [vmem:[%s2109_s28 + $0x190] sm:$0xff] %vm532_vm1, %v1153_v28 }
 0x281   : > { %1610 = vst.msk [vmem:[%s2109_s28 + $0x198] sm:$0xff] %vm532_vm1, %v1155_v27 }
 0x283   : > { %v1157_v32 = vpop.permute.xlu0 %1156 }
 0x284   : > { %v1159_v31 = vpop.permute.xlu1 %1158  ;;  %1611 = vst.msk [vmem:[%s2109_s28 + $0x1a0] sm:$0xff] %vm532_vm1, %v1157_v32 }
 0x285   : > { %1612 = vst.msk [vmem:[%s2109_s28 + $0x1a8] sm:$0xff] %vm532_vm1, %v1159_v31 }
 0x287   : > { %v1161_v36 = vpop.permute.xlu0 %1160 }
 0x288   : > { %v1163_v34 = vpop.permute.xlu1 %1162  ;;  %1613 = vst.msk [vmem:[%s2109_s28 + $0x1b0] sm:$0xff] %vm532_vm1, %v1161_v36 }
 0x289   : > { %1614 = vst.msk [vmem:[%s2109_s28 + $0x1b8] sm:$0xff] %vm532_vm1, %v1163_v34 }
 0x28b   : > { %v1165_v40 = vpop.permute.xlu0 %1164 }
 0x28c   : > { %v1167_v39 = vpop.permute.xlu1 %1166  ;;  %1615 = vst.msk [vmem:[%s2109_s28 + $0x1c0] sm:$0xff] %vm532_vm1, %v1165_v40 }
 0x28d   : > { %1616 = vst.msk [vmem:[%s2109_s28 + $0x1c8] sm:$0xff] %vm532_vm1, %v1167_v39 }
 0x28f   : > { %v1169_v44 = vpop.permute.xlu0 %1168 }
 0x290   : > { %v1171_v42 = vpop.permute.xlu1 %1170  ;;  %1617 = vst.msk [vmem:[%s2109_s28 + $0x1d0] sm:$0xff] %vm532_vm1, %v1169_v44 }
 0x291   : > { %1618 = vst.msk [vmem:[%s2109_s28 + $0x1d8] sm:$0xff] %vm532_vm1, %v1171_v42 }
 0x293   : > { %v1173_v49 = vpop.permute.xlu0 %1172 }
 0x294   : > { %v1175_v47 = vpop.permute.xlu1 %1174  ;;  %1619 = vst.msk [vmem:[%s2109_s28 + $0x1e0] sm:$0xff] %vm532_vm1, %v1173_v49 }
 0x295   : > { %1620 = vst.msk [vmem:[%s2109_s28 + $0x1e8] sm:$0xff] %vm532_vm1, %v1175_v47 }
 0x297   : > { %v1177_v53 = vpop.permute.xlu0 %1176 }
 0x298   : > { %v1179_v51 = vpop.permute.xlu1 %1178  ;;  %1621 = vst.msk [vmem:[%s2109_s28 + $0x1f0] sm:$0xff] %vm532_vm1, %v1177_v53 }
 0x299   : > { %1622 = vst.msk [vmem:[%s2109_s28 + $0x1f8] sm:$0xff] %vm532_vm1, %v1179_v51 }
 0x29b   : > { %v1214_v56 = vpop.permute.xlu0 %1213 }
 0x29c   : > { %v1216_v55 = vpop.permute.xlu1 %1215  ;;  %1623 = vst.msk [vmem:[%s2123_s6 + $0x180] sm:$0xff] %vm532_vm1, %v1214_v56 }
 0x29d   : > { %1624 = vst.msk [vmem:[%s2123_s6 + $0x188] sm:$0xff] %vm532_vm1, %v1216_v55 }
 0x29f   : > { %v1218_v58 = vpop.permute.xlu0 %1217 }
 0x2a0   : > { %v1220_v57 = vpop.permute.xlu1 %1219  ;;  %1625 = vst.msk [vmem:[%s2123_s6 + $0x190] sm:$0xff] %vm532_vm1, %v1218_v58 }
 0x2a1   : > { %1626 = vst.msk [vmem:[%s2123_s6 + $0x198] sm:$0xff] %vm532_vm1, %v1220_v57 }
 0x2a3   : > { %v1222_v60 = vpop.permute.xlu0 %1221 }
 0x2a4   : > { %v1224_v59 = vpop.permute.xlu1 %1223  ;;  %1627 = vst.msk [vmem:[%s2123_s6 + $0x1a0] sm:$0xff] %vm532_vm1, %v1222_v60 }
 0x2a5   : > { %1628 = vst.msk [vmem:[%s2123_s6 + $0x1a8] sm:$0xff] %vm532_vm1, %v1224_v59 }
 0x2a7   : > { %v1226_v62 = vpop.permute.xlu0 %1225 }
 0x2a8   : > { %v1228_v61 = vpop.permute.xlu1 %1227  ;;  %1629 = vst.msk [vmem:[%s2123_s6 + $0x1b0] sm:$0xff] %vm532_vm1, %v1226_v62 }
 0x2a9   : > { %1630 = vst.msk [vmem:[%s2123_s6 + $0x1b8] sm:$0xff] %vm532_vm1, %v1228_v61 }
 0x2ab   : > { %v1230_v0 = vpop.permute.xlu0 %1229 }
 0x2ac   : > { %v1232_v63 = vpop.permute.xlu1 %1231  ;;  %1631 = vst.msk [vmem:[%s2123_s6 + $0x1c0] sm:$0xff] %vm532_vm1, %v1230_v0 }
 0x2ad   : > { %1632 = vst.msk [vmem:[%s2123_s6 + $0x1c8] sm:$0xff] %vm532_vm1, %v1232_v63 }
 0x2af   : > { %v1234_v1 = vpop.permute.xlu0 %1233 }
 0x2b0   : > { %v1236_v25 = vpop.permute.xlu1 %1235  ;;  %1633 = vst.msk [vmem:[%s2123_s6 + $0x1d0] sm:$0xff] %vm532_vm1, %v1234_v1 }
 0x2b1   : > { %1634 = vst.msk [vmem:[%s2123_s6 + $0x1d8] sm:$0xff] %vm532_vm1, %v1236_v25 }
 0x2b3   : > { %v1238_v33 = vpop.permute.xlu0 %1237 }
 0x2b4   : > { %v1240_v29 = vpop.permute.xlu1 %1239  ;;  %1635 = vst.msk [vmem:[%s2123_s6 + $0x1e0] sm:$0xff] %vm532_vm1, %v1238_v33 }
 0x2b5   : > { %1636 = vst.msk [vmem:[%s2123_s6 + $0x1e8] sm:$0xff] %vm532_vm1, %v1240_v29 }
 0x2b7   : > { %v1242_v41 = vpop.permute.xlu0 %1241 }
 0x2b8   : > { %v1244_v37 = vpop.permute.xlu1 %1243  ;;  %1637 = vst.msk [vmem:[%s2123_s6 + $0x1f0] sm:$0xff] %vm532_vm1, %v1242_v41 }
 0x2b9   : > { %1638 = vst.msk [vmem:[%s2123_s6 + $0x1f8] sm:$0xff] %vm532_vm1, %v1244_v37 }
 0x2ba PF: > { %s16_s20 = sadd.s32 1, %s1766_s20   ;;  %s2720_s18 = smov %s1762_s19 }
 0x2bb   : > { %p13_p5 = scmp.ge.s32.totalorder %s16_s20, 4   ;;  %s2721_s19 = smov %s2723_s21 }
 0x2bd   :  { %15 = sbr.rel (!%p13_p5) target bundleno = 2 (0x2), region = 95 }

</bundles_post_ra>
